<compile_context>
chip_gen: v5e
topology: v5e:2x2
jax: 0.10.0
libtpu: 0.0.40
codegen_flags: <defaults>
</compile_context>

<pallas_src>
import functools

import jax
import jax.numpy as jnp
from jax.experimental import pallas as pl
from jax.experimental.pallas import tpu as pltpu

# train_eps=False, initial_eps=0.0 -> compile-time constants.
# TODO(synk): if train_eps=True these become SMEM scalar inputs.
GNN_EPS = 0.0
ROOT_EPS = 0.0
BN_EPS = 1e-5


# --------------------------------------------------------------------------
# In-kernel helpers
# --------------------------------------------------------------------------
def _bn(x, gamma, beta, eps):
    """Training-mode BatchNorm1d over rows (biased variance)."""
    mean = jnp.mean(x, axis=0, keepdims=True)
    var = jnp.mean(jnp.square(x - mean), axis=0, keepdims=True)
    return (x - mean) * jax.lax.rsqrt(var + eps) * gamma + beta


# --------------------------------------------------------------------------
# Single fused kernel: encoder (l==0) -> layer l -> pool+decode (l==last)
# --------------------------------------------------------------------------
def _fused_forward_kernel(
        x_ref, z_ref, src_ref, dst_ref, root_ref, nidx_ref,
        enc_w_ref, enc_b_ref, zemb_ref, w_ref, v_ref, jk_w_ref, jk_b_ref,
        o_ref,
        h_sc, m1_sc, m2_sc,
        *, num_z, num_second, eps, root_eps, bn_eps):
    l = pl.program_id(0)
    T, H = h_sc.shape
    E = src_ref.shape[0]

    # ---- prologue (only at layer 0): input encoding + structure matrices ---
    @pl.when(l == 0)
    def _():
        # h = x @ W_enc + b_enc + Embedding(z0)   (gather via one-hot on MXU)
        h = jnp.dot(x_ref[...], enc_w_ref[...],
                    preferred_element_type=jnp.float32) + enc_b_ref[...]
        z_oh = (jax.lax.broadcasted_iota(jnp.int32, (T, num_z), 1)
                == z_ref[...]).astype(jnp.float32)
        h = h + jnp.dot(z_oh, zemb_ref[...],
                        preferred_element_type=jnp.float32)
        h_sc[...] = h

        # Structure matrices built ONCE, reused by every layer:
        #   A[i, j]  = #edges j->i            (A @ h == scatter_add(h[src]->dst))
        #   R[i, j]  = (j == root_idx[node_idx][i])   (R @ h == h[root][node])
        src_oh = (jax.lax.broadcasted_iota(jnp.int32, (E, T), 1)
                  == src_ref[...]).astype(jnp.float32)
        dst_oh = (jax.lax.broadcasted_iota(jnp.int32, (T, E), 0)
                  == dst_ref[...]).astype(jnp.float32)
        adj = jnp.dot(dst_oh, src_oh, preferred_element_type=jnp.float32)
        rows = jax.lax.broadcasted_iota(jnp.int32, (T, T), 0)
        cols = jax.lax.broadcasted_iota(jnp.int32, (T, T), 1)
        eye = (rows == cols).astype(jnp.float32)
        m1_sc[...] = adj + (1.0 + eps) * eye
        root_oh = (cols == root_ref[...]).astype(jnp.float32)
        m2_sc[...] = root_oh + (1.0 + root_eps) * eye

    # ---- one N2GNN layer (per-layer weights pipelined via block index l) ---
    h = h_sc[...]
    V = v_ref[...]                               # (12, H) stacked vectors

    def vrow(i):                                 # lane-dense (1, H) slice
        return V[i:i + 1, :]

    # gnn branch: norms[l]( GIN_MLP( (1+eps)*h + scatter_add(h[src]->dst) ) )
    pre = jnp.dot(m1_sc[...], h, preferred_element_type=jnp.float32)
    t = jnp.dot(pre, w_ref[0], preferred_element_type=jnp.float32) + vrow(0)
    t = jnp.maximum(_bn(t, vrow(1), vrow(2), bn_eps), 0.0)
    t = jnp.dot(t, w_ref[1], preferred_element_type=jnp.float32) + vrow(3)
    out = _bn(t, vrow(4), vrow(5), bn_eps)

    # root branch: root_norms[l]( root_mlp( (1+eps)*h + h[root_idx][node_idx]) )
    pre_r = jnp.dot(m2_sc[...], h, preferred_element_type=jnp.float32)
    r = jnp.dot(pre_r, w_ref[2], preferred_element_type=jnp.float32) + vrow(6)
    r = jnp.maximum(_bn(r, vrow(7), vrow(8), bn_eps), 0.0)
    r = jnp.dot(r, w_ref[3], preferred_element_type=jnp.float32) + vrow(9)
    r = _bn(r, vrow(10), vrow(11), bn_eps)

    # dropout(p=0.0) -> identity; residual=False
    h_sc[...] = out + r

    # ---- epilogue (last layer): global_add_pool + JK='last' Linear head ----
    @pl.when(l == pl.num_programs(0) - 1)
    def _():
        pool_oh = (jax.lax.broadcasted_iota(jnp.int32, (num_second, T), 0)
                   == nidx_ref[...]).astype(jnp.float32)
        pooled = jnp.dot(pool_oh, h_sc[...],
                         preferred_element_type=jnp.float32)
        y = jnp.dot(pooled, jk_w_ref[...],
                    preferred_element_type=jnp.float32) + jk_b_ref[...]
        o_ref[...] = y.astype(o_ref.dtype)


# --------------------------------------------------------------------------
# N2GNN forward (jit-compiled; exactly ONE pallas_call)
# --------------------------------------------------------------------------
@functools.partial(jax.jit, static_argnames=("num_second", "num_layers"))
def n2gnn_forward(params, x, z0, edge_index, root_idx, node_idx,
                  num_second, num_layers):
    T, K = x.shape
    H = params["init_w"].shape[1]
    E = edge_index.shape[1]
    num_z = params["z_emb"].shape[0]

    # Integer metadata prep (cheap glue on indices, no feature HBM traffic).
    z_t1 = z0.reshape(T, 1).astype(jnp.int32)
    src_e1 = edge_index[0].reshape(E, 1).astype(jnp.int32)
    dst_1e = edge_index[1].reshape(1, E).astype(jnp.int32)
    root_t1 = jnp.take(root_idx, node_idx).reshape(T, 1).astype(jnp.int32)
    nidx_1t = node_idx.reshape(1, T).astype(jnp.int32)

    kernel = functools.partial(
        _fused_forward_kernel, num_z=num_z, num_second=num_second,
        eps=GNN_EPS, root_eps=ROOT_EPS, bn_eps=BN_EPS)

    # TODO(synk): exact N2GNN+ hierarchical (first2second/second2tuple)
    # aggregation is defined by the injected gnn_layer; GIN-style scatter-add
    # over edge_index is used instead.
    return pl.pallas_call(
        kernel,
        out_shape=jax.ShapeDtypeStruct((num_second, H), jnp.float32),
        grid=(num_layers,),
        in_specs=[
            pl.BlockSpec((T, K), lambda l: (0, 0)),            # x
            pl.BlockSpec((T, 1), lambda l: (0, 0)),            # z0
            pl.BlockSpec((E, 1), lambda l: (0, 0)),            # src
            pl.BlockSpec((1, E), lambda l: (0, 0)),            # dst
            pl.BlockSpec((T, 1), lambda l: (0, 0)),            # root_idx[node_idx]
            pl.BlockSpec((1, T), lambda l: (0, 0)),            # node_idx
            pl.BlockSpec((K, H), lambda l: (0, 0)),            # enc W
            pl.BlockSpec((1, H), lambda l: (0, 0)),            # enc b
            pl.BlockSpec((num_z, H), lambda l: (0, 0)),        # z embedding
            pl.BlockSpec((None, 4, H, H), lambda l: (l, 0, 0, 0)),   # layer Ws
            pl.BlockSpec((None, 12, H), lambda l: (l, 0, 0)),        # layer vecs
            pl.BlockSpec((H, H), lambda l: (0, 0)),            # jk W
            pl.BlockSpec((1, H), lambda l: (0, 0)),            # jk b
        ],
        out_specs=pl.BlockSpec((num_second, H), lambda l: (0, 0)),
        scratch_shapes=[
            pltpu.VMEM((T, H), jnp.float32),   # h (resident across layers)
            pltpu.VMEM((T, T), jnp.float32),   # M1 = (1+eps)I + A
            pltpu.VMEM((T, T), jnp.float32),   # M2 = (1+root_eps)I + R
        ],
        compiler_params=pltpu.CompilerParams(
            dimension_semantics=("arbitrary",)),
    )(x, z_t1, src_e1, dst_1e, root_t1, nidx_1t,
      params["init_w"], params["init_b"].reshape(1, H), params["z_emb"],
      params["w_stack"], params["v_stack"],
      params["jk_w"], params["jk_b"].reshape(1, H))


# --------------------------------------------------------------------------
# Parameter init (deterministic, synthetic)
# --------------------------------------------------------------------------
def _dense_init(key, fan_in, fan_out):
    kw, kb = jax.random.split(key)
    w = jax.random.normal(kw, (fan_in, fan_out), jnp.float32) / jnp.sqrt(fan_in)
    b = jax.random.normal(kb, (fan_out,), jnp.float32) * 0.01
    return w, b


def init_params(key, in_dim, hidden, num_layers, num_z):
    keys = jax.random.split(key, 3 + num_layers)
    init_w, init_b = _dense_init(keys[0], in_dim, hidden)
    z_emb = jax.random.normal(keys[1], (num_z, hidden), jnp.float32) * 0.1
    jk_w, jk_b = _dense_init(keys[2], hidden, hidden)

    ones = jnp.ones((hidden,), jnp.float32)
    zeros = jnp.zeros((hidden,), jnp.float32)
    w_list, v_list = [], []
    for l in range(num_layers):
        k1, k2, k3, k4 = jax.random.split(keys[3 + l], 4)
        w1, b1 = _dense_init(k1, hidden, hidden)       # gnn MLP
        w2, b2 = _dense_init(k2, hidden, hidden)
        rw1, rb1 = _dense_init(k3, hidden, hidden)     # root MLP
        rw2, rb2 = _dense_init(k4, hidden, hidden)
        # weights: [gnn_w1, gnn_w2, root_w1, root_w2]
        w_list.append(jnp.stack([w1, w2, rw1, rw2]))
        # vectors: [b1, g1, be1, b2, norm_g, norm_b,
        #           rb1, rg1, rbe1, rb2, root_norm_g, root_norm_b]
        v_list.append(jnp.stack([b1, ones, zeros, b2, ones, zeros,
                                 rb1, ones, zeros, rb2, ones, zeros]))
    return {
        "init_w": init_w, "init_b": init_b, "z_emb": z_emb,
        "jk_w": jk_w, "jk_b": jk_b,
        "w_stack": jnp.stack(w_list),      # (L, 4, H, H)
        "v_stack": jnp.stack(v_list),      # (L, 12, H)
    }


# --------------------------------------------------------------------------
# Pure-JAX reference (for correctness check)
# --------------------------------------------------------------------------
def n2gnn_reference(params, x, z0, edge_index, root_idx, node_idx,
                    num_second, num_layers):
    def bn(v, g, b):
        m = v.mean(0, keepdims=True)
        var = jnp.square(v - m).mean(0, keepdims=True)
        return (v - m) / jnp.sqrt(var + BN_EPS) * g + b

    h = x @ params["init_w"] + params["init_b"] + params["z_emb"][z0]
    src, dst = edge_index[0], edge_index[1]
    root_gather = jnp.take(root_idx, node_idx)
    for l in range(num_layers):
        W = params["w_stack"][l]
        V = params["v_stack"][l]
        aggr = jax.ops.segment_sum(h[src], dst, num_segments=h.shape[0])
        pre = (1.0 + GNN_EPS) * h + aggr
        t = jnp.maximum(bn(pre @ W[0] + V[0], V[1], V[2]), 0.0)
        out = bn(t @ W[1] + V[3], V[4], V[5])
        pre_r = (1.0 + ROOT_EPS) * h + h[root_gather]
        r = jnp.maximum(bn(pre_r @ W[2] + V[6], V[7], V[8]), 0.0)
        r = bn(r @ W[3] + V[9], V[10], V[11])
        h = out + r
    pooled = jax.ops.segment_sum(h, node_idx, num_segments=num_second)
    return pooled @ params["jk_w"] + params["jk_b"]


# --------------------------------------------------------------------------
if __name__ == "__main__":
    T = 32           # tuple nodes
    IN_DIM = 16      # raw feature dim
    HIDDEN = 128     # hidden channels (lane-dense: multiple of 128)
    E = 64           # edges
    S = 8            # second-level (pooled) nodes / roots
    NUM_Z = 16       # vocab for the z0 feature encoder
    NUM_LAYERS = 2

    key = jax.random.PRNGKey(0)
    k1, k2, k3, k4, k5 = jax.random.split(key, 5)
    x = jax.random.normal(k1, (T, IN_DIM), jnp.float32)
    z0 = jax.random.randint(k2, (T,), 0, NUM_Z)
    edge_index = jax.random.randint(k3, (2, E), 0, T)
    node_idx = jax.random.randint(k4, (T,), 0, S)    # data.tuple2second
    root_idx = jax.random.randint(k5, (S,), 0, T)    # data.root_index

    params = init_params(jax.random.PRNGKey(1), IN_DIM, HIDDEN,
                         NUM_LAYERS, NUM_Z)

    out = n2gnn_forward(params, x, z0, edge_index, root_idx, node_idx,
                        num_second=S, num_layers=NUM_LAYERS)
    jax.block_until_ready(out)
    assert out.shape == (S, HIDDEN)

    ref = n2gnn_reference(params, x, z0, edge_index, root_idx, node_idx,
                          S, NUM_LAYERS)
    assert bool(jnp.isfinite(out).all())
    assert bool(jnp.allclose(out, ref, rtol=5e-2, atol=5e-2)), (
        float(jnp.max(jnp.abs(out - ref))))
    print("KERNEL_OK")
</pallas_src>

<mosaic_0001>
module attributes {stable_mosaic.version = 11 : i64} {
  func.func @_fused_forward_kernel(%arg0: i32, %arg1: memref<32x16xf32, #tpu.memory_space<vmem>>, %arg2: memref<32x1xi32, #tpu.memory_space<vmem>>, %arg3: memref<64x1xi32, #tpu.memory_space<vmem>>, %arg4: memref<1x64xi32, #tpu.memory_space<vmem>>, %arg5: memref<32x1xi32, #tpu.memory_space<vmem>>, %arg6: memref<1x32xi32, #tpu.memory_space<vmem>>, %arg7: memref<16x128xf32, #tpu.memory_space<vmem>>, %arg8: memref<1x128xf32, #tpu.memory_space<vmem>>, %arg9: memref<16x128xf32, #tpu.memory_space<vmem>>, %arg10: memref<1x4x128x128xf32, #tpu.memory_space<vmem>>, %arg11: memref<1x12x128xf32, #tpu.memory_space<vmem>>, %arg12: memref<128x128xf32, #tpu.memory_space<vmem>>, %arg13: memref<1x128xf32, #tpu.memory_space<vmem>>, %arg14: memref<8x128xf32, #tpu.memory_space<vmem>>, %arg15: memref<32x128xf32, #tpu.memory_space<vmem>>, %arg16: memref<32x32xf32, #tpu.memory_space<vmem>>, %arg17: memref<32x32xf32, #tpu.memory_space<vmem>>) attributes {dimension_semantics = [#tpu.dimension_semantics<arbitrary>], iteration_bounds = array<i64: 2>, scalar_prefetch = 0 : i64, scratch_operands = 3 : i64, tpu.core_type = #tpu.core_type<tc>, window_params = [{pipeline_mode = #tpu.pipeline_mode<synchronous>, transform_indices = @transform_0, window_bounds = array<i64: 32, 16>}, {pipeline_mode = #tpu.pipeline_mode<synchronous>, transform_indices = @transform_1, window_bounds = array<i64: 32, 1>}, {pipeline_mode = #tpu.pipeline_mode<synchronous>, transform_indices = @transform_2, window_bounds = array<i64: 64, 1>}, {pipeline_mode = #tpu.pipeline_mode<synchronous>, transform_indices = @transform_3, window_bounds = array<i64: 1, 64>}, {pipeline_mode = #tpu.pipeline_mode<synchronous>, transform_indices = @transform_4, window_bounds = array<i64: 32, 1>}, {pipeline_mode = #tpu.pipeline_mode<synchronous>, transform_indices = @transform_5, window_bounds = array<i64: 1, 32>}, {pipeline_mode = #tpu.pipeline_mode<synchronous>, transform_indices = @transform_6, window_bounds = array<i64: 16, 128>}, {pipeline_mode = #tpu.pipeline_mode<synchronous>, transform_indices = @transform_7, window_bounds = array<i64: 1, 128>}, {pipeline_mode = #tpu.pipeline_mode<synchronous>, transform_indices = @transform_8, window_bounds = array<i64: 16, 128>}, {transform_indices = @transform_9, window_bounds = array<i64: 1, 4, 128, 128>}, {transform_indices = @transform_10, window_bounds = array<i64: 1, 12, 128>}, {pipeline_mode = #tpu.pipeline_mode<synchronous>, transform_indices = @transform_11, window_bounds = array<i64: 128, 128>}, {pipeline_mode = #tpu.pipeline_mode<synchronous>, transform_indices = @transform_12, window_bounds = array<i64: 1, 128>}, {pipeline_mode = #tpu.pipeline_mode<synchronous>, transform_indices = @transform_13, window_bounds = array<i64: 8, 128>}]} {
    %c0_i32 = arith.constant 0 : i32
    %0 = arith.cmpi eq, %arg0, %c0_i32 : i32
    %1 = arith.extui %0 : i1 to i32
    %c0_i32_0 = arith.constant 0 : i32
    %2 = arith.cmpi ne, %1, %c0_i32_0 : i32
    scf.if %2 {
      %c0_52 = arith.constant 0 : index
      %c0_53 = arith.constant 0 : index
      %139 = vector.load %arg1[%c0_52, %c0_53] : memref<32x16xf32, #tpu.memory_space<vmem>>, vector<32x16xf32>
      %c0_54 = arith.constant 0 : index
      %c0_55 = arith.constant 0 : index
      %140 = vector.load %arg7[%c0_54, %c0_55] : memref<16x128xf32, #tpu.memory_space<vmem>>, vector<16x128xf32>
      %cst_56 = arith.constant dense<0.000000e+00> : vector<32x128xf32>
      %141 = tpu.matmul %139, %140, %cst_56 {dimension_numbers = #tpu.dot_dimension_numbers<[1], [0], [0], [1], [0, 0, 1, 1], [], []>} : vector<32x16xf32>, vector<16x128xf32>, vector<32x128xf32> -> vector<32x128xf32>
      %c0_57 = arith.constant 0 : index
      %c0_58 = arith.constant 0 : index
      %142 = vector.load %arg8[%c0_57, %c0_58] : memref<1x128xf32, #tpu.memory_space<vmem>>, vector<1x128xf32>
      %143 = vector.broadcast %142 : vector<1x128xf32> to vector<32x128xf32>
      %144 = arith.addf %141, %143 : vector<32x128xf32>
      %145 = tpu.iota {dimensions = array<i32: 1>} : vector<32x16xi32>
      %c0_59 = arith.constant 0 : index
      %c0_60 = arith.constant 0 : index
      %146 = vector.load %arg2[%c0_59, %c0_60] : memref<32x1xi32, #tpu.memory_space<vmem>>, vector<32x1xi32>
      %147 = vector.broadcast %146 : vector<32x1xi32> to vector<32x16xi32>
      %148 = arith.cmpi eq, %145, %147 : vector<32x16xi32>
      %149 = arith.extui %148 : vector<32x16xi1> to vector<32x16xi32>
      %150 = arith.sitofp %149 : vector<32x16xi32> to vector<32x16xf32>
      %c0_61 = arith.constant 0 : index
      %c0_62 = arith.constant 0 : index
      %151 = vector.load %arg9[%c0_61, %c0_62] : memref<16x128xf32, #tpu.memory_space<vmem>>, vector<16x128xf32>
      %cst_63 = arith.constant dense<0.000000e+00> : vector<32x128xf32>
      %152 = tpu.matmul %150, %151, %cst_63 {dimension_numbers = #tpu.dot_dimension_numbers<[1], [0], [0], [1], [0, 0, 1, 1], [], []>} : vector<32x16xf32>, vector<16x128xf32>, vector<32x128xf32> -> vector<32x128xf32>
      %153 = arith.addf %144, %152 : vector<32x128xf32>
      %c0_64 = arith.constant 0 : index
      %c0_65 = arith.constant 0 : index
      %154 = vector.load %arg15[%c0_64, %c0_65] : memref<32x128xf32, #tpu.memory_space<vmem>>, vector<32x128xf32>
      tpu.vector_store %arg15[%c0_64, %c0_65], %153 {strides = array<i32>} : memref<32x128xf32, #tpu.memory_space<vmem>>, vector<32x128xf32>,
      %155 = tpu.iota {dimensions = array<i32: 1>} : vector<64x32xi32>
      %c0_66 = arith.constant 0 : index
      %c0_67 = arith.constant 0 : index
      %156 = vector.load %arg3[%c0_66, %c0_67] : memref<64x1xi32, #tpu.memory_space<vmem>>, vector<64x1xi32>
      %157 = vector.broadcast %156 : vector<64x1xi32> to vector<64x32xi32>
      %158 = arith.cmpi eq, %155, %157 : vector<64x32xi32>
      %159 = arith.extui %158 : vector<64x32xi1> to vector<64x32xi32>
      %160 = arith.sitofp %159 : vector<64x32xi32> to vector<64x32xf32>
      %161 = tpu.iota {dimensions = array<i32: 0>} : vector<32x64xi32>
      %c0_68 = arith.constant 0 : index
      %c0_69 = arith.constant 0 : index
      %162 = vector.load %arg4[%c0_68, %c0_69] : memref<1x64xi32, #tpu.memory_space<vmem>>, vector<1x64xi32>
      %163 = vector.broadcast %162 : vector<1x64xi32> to vector<32x64xi32>
      %164 = arith.cmpi eq, %161, %163 : vector<32x64xi32>
      %165 = arith.extui %164 : vector<32x64xi1> to vector<32x64xi32>
      %166 = arith.sitofp %165 : vector<32x64xi32> to vector<32x64xf32>
      %cst_70 = arith.constant dense<0.000000e+00> : vector<32x32xf32>
      %167 = tpu.matmul %166, %160, %cst_70 {dimension_numbers = #tpu.dot_dimension_numbers<[1], [0], [0], [1], [0, 0, 1, 1], [], []>} : vector<32x64xf32>, vector<64x32xf32>, vector<32x32xf32> -> vector<32x32xf32>
      %168 = tpu.iota {dimensions = array<i32: 0>} : vector<32x32xi32>
      %169 = tpu.iota {dimensions = array<i32: 1>} : vector<32x32xi32>
      %170 = arith.cmpi eq, %168, %169 : vector<32x32xi32>
      %171 = arith.extui %170 : vector<32x32xi1> to vector<32x32xi32>
      %172 = arith.sitofp %171 : vector<32x32xi32> to vector<32x32xf32>
      %cst_71 = arith.constant 1.000000e+00 : f32
      %173 = vector.broadcast %cst_71 : f32 to vector<32x32xf32>
      %174 = arith.mulf %173, %172 : vector<32x32xf32>
      %175 = arith.addf %167, %174 : vector<32x32xf32>
      %c0_72 = arith.constant 0 : index
      %c0_73 = arith.constant 0 : index
      %176 = vector.load %arg16[%c0_72, %c0_73] : memref<32x32xf32, #tpu.memory_space<vmem>>, vector<32x32xf32>
      tpu.vector_store %arg16[%c0_72, %c0_73], %175 {strides = array<i32>} : memref<32x32xf32, #tpu.memory_space<vmem>>, vector<32x32xf32>,
      %c0_74 = arith.constant 0 : index
      %c0_75 = arith.constant 0 : index
      %177 = vector.load %arg5[%c0_74, %c0_75] : memref<32x1xi32, #tpu.memory_space<vmem>>, vector<32x1xi32>
      %178 = vector.broadcast %177 : vector<32x1xi32> to vector<32x32xi32>
      %179 = arith.cmpi eq, %169, %178 : vector<32x32xi32>
      %180 = arith.extui %179 : vector<32x32xi1> to vector<32x32xi32>
      %181 = arith.sitofp %180 : vector<32x32xi32> to vector<32x32xf32>
      %cst_76 = arith.constant 1.000000e+00 : f32
      %182 = vector.broadcast %cst_76 : f32 to vector<32x32xf32>
      %183 = arith.mulf %182, %172 : vector<32x32xf32>
      %184 = arith.addf %181, %183 : vector<32x32xf32>
      %c0_77 = arith.constant 0 : index
      %c0_78 = arith.constant 0 : index
      %185 = vector.load %arg17[%c0_77, %c0_78] : memref<32x32xf32, #tpu.memory_space<vmem>>, vector<32x32xf32>
      tpu.vector_store %arg17[%c0_77, %c0_78], %184 {strides = array<i32>} : memref<32x32xf32, #tpu.memory_space<vmem>>, vector<32x32xf32>,
    } else {
    }
    %c0 = arith.constant 0 : index
    %c0_1 = arith.constant 0 : index
    %3 = vector.load %arg15[%c0, %c0_1] : memref<32x128xf32, #tpu.memory_space<vmem>>, vector<32x128xf32>
    %c0_2 = arith.constant 0 : index
    %c0_3 = arith.constant 0 : index
    %c0_4 = arith.constant 0 : index
    %4 = vector.load %arg11[%c0_2, %c0_3, %c0_4] : memref<1x12x128xf32, #tpu.memory_space<vmem>>, vector<1x12x128xf32>
    %5 = vector.shape_cast %4 : vector<1x12x128xf32> to vector<12x128xf32>
    %c0_5 = arith.constant 0 : index
    %c0_6 = arith.constant 0 : index
    %6 = vector.load %arg16[%c0_5, %c0_6] : memref<32x32xf32, #tpu.memory_space<vmem>>, vector<32x32xf32>
    %cst = arith.constant dense<0.000000e+00> : vector<32x128xf32>
    %7 = tpu.matmul %6, %3, %cst {dimension_numbers = #tpu.dot_dimension_numbers<[1], [0], [0], [1], [0, 0, 1, 1], [], []>} : vector<32x32xf32>, vector<32x128xf32>, vector<32x128xf32> -> vector<32x128xf32>
    %c0_7 = arith.constant 0 : index
    %c0_8 = arith.constant 0 : index
    %c0_9 = arith.constant 0 : index
    %c0_10 = arith.constant 0 : index
    %8 = vector.load %arg10[%c0_7, %c0_8, %c0_9, %c0_10] : memref<1x4x128x128xf32, #tpu.memory_space<vmem>>, vector<1x1x128x128xf32>
    %9 = vector.shape_cast %8 : vector<1x1x128x128xf32> to vector<128x128xf32>
    %cst_11 = arith.constant dense<0.000000e+00> : vector<32x128xf32>
    %10 = tpu.matmul %7, %9, %cst_11 {dimension_numbers = #tpu.dot_dimension_numbers<[1], [0], [0], [1], [0, 0, 1, 1], [], []>} : vector<32x128xf32>, vector<128x128xf32>, vector<32x128xf32> -> vector<32x128xf32>
    %11 = vector.extract_strided_slice %5 {offsets = [0, 0], sizes = [1, 128], strides = [1, 1]} : vector<12x128xf32> to vector<1x128xf32>
    %12 = vector.broadcast %11 : vector<1x128xf32> to vector<32x128xf32>
    %13 = arith.addf %10, %12 : vector<32x128xf32>
    %14 = vector.extract_strided_slice %5 {offsets = [1, 0], sizes = [1, 128], strides = [1, 1]} : vector<12x128xf32> to vector<1x128xf32>
    %15 = vector.extract_strided_slice %5 {offsets = [2, 0], sizes = [1, 128], strides = [1, 1]} : vector<12x128xf32> to vector<1x128xf32>
    %cst_12 = arith.constant dense<0.000000e+00> : vector<128xf32>
    %16 = vector.multi_reduction <add>, %13, %cst_12 [0] : vector<32x128xf32> to vector<128xf32>
    %17 = vector.shape_cast %16 : vector<128xf32> to vector<1x128xf32>
    %cst_13 = arith.constant 3.200000e+01 : f32
    %18 = vector.broadcast %cst_13 : f32 to vector<1x128xf32>
    %19 = arith.divf %17, %18 : vector<1x128xf32>
    %20 = vector.broadcast %19 : vector<1x128xf32> to vector<32x128xf32>
    %21 = arith.subf %13, %20 : vector<32x128xf32>
    %22 = arith.mulf %21, %21 : vector<32x128xf32>
    %cst_14 = arith.constant dense<0.000000e+00> : vector<128xf32>
    %23 = vector.multi_reduction <add>, %22, %cst_14 [0] : vector<32x128xf32> to vector<128xf32>
    %24 = vector.shape_cast %23 : vector<128xf32> to vector<1x128xf32>
    %cst_15 = arith.constant 3.200000e+01 : f32
    %25 = vector.broadcast %cst_15 : f32 to vector<1x128xf32>
    %26 = arith.divf %24, %25 : vector<1x128xf32>
    %27 = vector.broadcast %19 : vector<1x128xf32> to vector<32x128xf32>
    %28 = arith.subf %13, %27 : vector<32x128xf32>
    %cst_16 = arith.constant 9.99999974E-6 : f32
    %29 = vector.broadcast %cst_16 : f32 to vector<1x128xf32>
    %30 = arith.addf %26, %29 : vector<1x128xf32>
    %31 = math.rsqrt %30 : vector<1x128xf32>
    %32 = vector.broadcast %31 : vector<1x128xf32> to vector<32x128xf32>
    %33 = arith.mulf %28, %32 : vector<32x128xf32>
    %34 = vector.broadcast %14 : vector<1x128xf32> to vector<32x128xf32>
    %35 = arith.mulf %33, %34 : vector<32x128xf32>
    %36 = vector.broadcast %15 : vector<1x128xf32> to vector<32x128xf32>
    %37 = arith.addf %35, %36 : vector<32x128xf32>
    %cst_17 = arith.constant 0.000000e+00 : f32
    %38 = vector.broadcast %cst_17 : f32 to vector<32x128xf32>
    %39 = arith.maximumf %37, %38 : vector<32x128xf32>
    %c0_18 = arith.constant 0 : index
    %c1 = arith.constant 1 : index
    %c0_19 = arith.constant 0 : index
    %c0_20 = arith.constant 0 : index
    %40 = vector.load %arg10[%c0_18, %c1, %c0_19, %c0_20] : memref<1x4x128x128xf32, #tpu.memory_space<vmem>>, vector<1x1x128x128xf32>
    %41 = vector.shape_cast %40 : vector<1x1x128x128xf32> to vector<128x128xf32>
    %cst_21 = arith.constant dense<0.000000e+00> : vector<32x128xf32>
    %42 = tpu.matmul %39, %41, %cst_21 {dimension_numbers = #tpu.dot_dimension_numbers<[1], [0], [0], [1], [0, 0, 1, 1], [], []>} : vector<32x128xf32>, vector<128x128xf32>, vector<32x128xf32> -> vector<32x128xf32>
    %43 = vector.extract_strided_slice %5 {offsets = [3, 0], sizes = [1, 128], strides = [1, 1]} : vector<12x128xf32> to vector<1x128xf32>
    %44 = vector.broadcast %43 : vector<1x128xf32> to vector<32x128xf32>
    %45 = arith.addf %42, %44 : vector<32x128xf32>
    %46 = vector.extract_strided_slice %5 {offsets = [4, 0], sizes = [1, 128], strides = [1, 1]} : vector<12x128xf32> to vector<1x128xf32>
    %47 = vector.extract_strided_slice %5 {offsets = [5, 0], sizes = [1, 128], strides = [1, 1]} : vector<12x128xf32> to vector<1x128xf32>
    %cst_22 = arith.constant dense<0.000000e+00> : vector<128xf32>
    %48 = vector.multi_reduction <add>, %45, %cst_22 [0] : vector<32x128xf32> to vector<128xf32>
    %49 = vector.shape_cast %48 : vector<128xf32> to vector<1x128xf32>
    %cst_23 = arith.constant 3.200000e+01 : f32
    %50 = vector.broadcast %cst_23 : f32 to vector<1x128xf32>
    %51 = arith.divf %49, %50 : vector<1x128xf32>
    %52 = vector.broadcast %51 : vector<1x128xf32> to vector<32x128xf32>
    %53 = arith.subf %45, %52 : vector<32x128xf32>
    %54 = arith.mulf %53, %53 : vector<32x128xf32>
    %cst_24 = arith.constant dense<0.000000e+00> : vector<128xf32>
    %55 = vector.multi_reduction <add>, %54, %cst_24 [0] : vector<32x128xf32> to vector<128xf32>
    %56 = vector.shape_cast %55 : vector<128xf32> to vector<1x128xf32>
    %cst_25 = arith.constant 3.200000e+01 : f32
    %57 = vector.broadcast %cst_25 : f32 to vector<1x128xf32>
    %58 = arith.divf %56, %57 : vector<1x128xf32>
    %59 = vector.broadcast %51 : vector<1x128xf32> to vector<32x128xf32>
    %60 = arith.subf %45, %59 : vector<32x128xf32>
    %cst_26 = arith.constant 9.99999974E-6 : f32
    %61 = vector.broadcast %cst_26 : f32 to vector<1x128xf32>
    %62 = arith.addf %58, %61 : vector<1x128xf32>
    %63 = math.rsqrt %62 : vector<1x128xf32>
    %64 = vector.broadcast %63 : vector<1x128xf32> to vector<32x128xf32>
    %65 = arith.mulf %60, %64 : vector<32x128xf32>
    %66 = vector.broadcast %46 : vector<1x128xf32> to vector<32x128xf32>
    %67 = arith.mulf %65, %66 : vector<32x128xf32>
    %68 = vector.broadcast %47 : vector<1x128xf32> to vector<32x128xf32>
    %69 = arith.addf %67, %68 : vector<32x128xf32>
    %c0_27 = arith.constant 0 : index
    %c0_28 = arith.constant 0 : index
    %70 = vector.load %arg17[%c0_27, %c0_28] : memref<32x32xf32, #tpu.memory_space<vmem>>, vector<32x32xf32>
    %cst_29 = arith.constant dense<0.000000e+00> : vector<32x128xf32>
    %71 = tpu.matmul %70, %3, %cst_29 {dimension_numbers = #tpu.dot_dimension_numbers<[1], [0], [0], [1], [0, 0, 1, 1], [], []>} : vector<32x32xf32>, vector<32x128xf32>, vector<32x128xf32> -> vector<32x128xf32>
    %c0_30 = arith.constant 0 : index
    %c2 = arith.constant 2 : index
    %c0_31 = arith.constant 0 : index
    %c0_32 = arith.constant 0 : index
    %72 = vector.load %arg10[%c0_30, %c2, %c0_31, %c0_32] : memref<1x4x128x128xf32, #tpu.memory_space<vmem>>, vector<1x1x128x128xf32>
    %73 = vector.shape_cast %72 : vector<1x1x128x128xf32> to vector<128x128xf32>
    %cst_33 = arith.constant dense<0.000000e+00> : vector<32x128xf32>
    %74 = tpu.matmul %71, %73, %cst_33 {dimension_numbers = #tpu.dot_dimension_numbers<[1], [0], [0], [1], [0, 0, 1, 1], [], []>} : vector<32x128xf32>, vector<128x128xf32>, vector<32x128xf32> -> vector<32x128xf32>
    %75 = vector.extract_strided_slice %5 {offsets = [6, 0], sizes = [1, 128], strides = [1, 1]} : vector<12x128xf32> to vector<1x128xf32>
    %76 = vector.broadcast %75 : vector<1x128xf32> to vector<32x128xf32>
    %77 = arith.addf %74, %76 : vector<32x128xf32>
    %78 = vector.extract_strided_slice %5 {offsets = [7, 0], sizes = [1, 128], strides = [1, 1]} : vector<12x128xf32> to vector<1x128xf32>
    %79 = vector.extract_strided_slice %5 {offsets = [8, 0], sizes = [1, 128], strides = [1, 1]} : vector<12x128xf32> to vector<1x128xf32>
    %cst_34 = arith.constant dense<0.000000e+00> : vector<128xf32>
    %80 = vector.multi_reduction <add>, %77, %cst_34 [0] : vector<32x128xf32> to vector<128xf32>
    %81 = vector.shape_cast %80 : vector<128xf32> to vector<1x128xf32>
    %cst_35 = arith.constant 3.200000e+01 : f32
    %82 = vector.broadcast %cst_35 : f32 to vector<1x128xf32>
    %83 = arith.divf %81, %82 : vector<1x128xf32>
    %84 = vector.broadcast %83 : vector<1x128xf32> to vector<32x128xf32>
    %85 = arith.subf %77, %84 : vector<32x128xf32>
    %86 = arith.mulf %85, %85 : vector<32x128xf32>
    %cst_36 = arith.constant dense<0.000000e+00> : vector<128xf32>
    %87 = vector.multi_reduction <add>, %86, %cst_36 [0] : vector<32x128xf32> to vector<128xf32>
    %88 = vector.shape_cast %87 : vector<128xf32> to vector<1x128xf32>
    %cst_37 = arith.constant 3.200000e+01 : f32
    %89 = vector.broadcast %cst_37 : f32 to vector<1x128xf32>
    %90 = arith.divf %88, %89 : vector<1x128xf32>
    %91 = vector.broadcast %83 : vector<1x128xf32> to vector<32x128xf32>
    %92 = arith.subf %77, %91 : vector<32x128xf32>
    %cst_38 = arith.constant 9.99999974E-6 : f32
    %93 = vector.broadcast %cst_38 : f32 to vector<1x128xf32>
    %94 = arith.addf %90, %93 : vector<1x128xf32>
    %95 = math.rsqrt %94 : vector<1x128xf32>
    %96 = vector.broadcast %95 : vector<1x128xf32> to vector<32x128xf32>
    %97 = arith.mulf %92, %96 : vector<32x128xf32>
    %98 = vector.broadcast %78 : vector<1x128xf32> to vector<32x128xf32>
    %99 = arith.mulf %97, %98 : vector<32x128xf32>
    %100 = vector.broadcast %79 : vector<1x128xf32> to vector<32x128xf32>
    %101 = arith.addf %99, %100 : vector<32x128xf32>
    %cst_39 = arith.constant 0.000000e+00 : f32
    %102 = vector.broadcast %cst_39 : f32 to vector<32x128xf32>
    %103 = arith.maximumf %101, %102 : vector<32x128xf32>
    %c0_40 = arith.constant 0 : index
    %c3 = arith.constant 3 : index
    %c0_41 = arith.constant 0 : index
    %c0_42 = arith.constant 0 : index
    %104 = vector.load %arg10[%c0_40, %c3, %c0_41, %c0_42] : memref<1x4x128x128xf32, #tpu.memory_space<vmem>>, vector<1x1x128x128xf32>
    %105 = vector.shape_cast %104 : vector<1x1x128x128xf32> to vector<128x128xf32>
    %cst_43 = arith.constant dense<0.000000e+00> : vector<32x128xf32>
    %106 = tpu.matmul %103, %105, %cst_43 {dimension_numbers = #tpu.dot_dimension_numbers<[1], [0], [0], [1], [0, 0, 1, 1], [], []>} : vector<32x128xf32>, vector<128x128xf32>, vector<32x128xf32> -> vector<32x128xf32>
    %107 = vector.extract_strided_slice %5 {offsets = [9, 0], sizes = [1, 128], strides = [1, 1]} : vector<12x128xf32> to vector<1x128xf32>
    %108 = vector.broadcast %107 : vector<1x128xf32> to vector<32x128xf32>
    %109 = arith.addf %106, %108 : vector<32x128xf32>
    %110 = vector.extract_strided_slice %5 {offsets = [10, 0], sizes = [1, 128], strides = [1, 1]} : vector<12x128xf32> to vector<1x128xf32>
    %111 = vector.extract_strided_slice %5 {offsets = [11, 0], sizes = [1, 128], strides = [1, 1]} : vector<12x128xf32> to vector<1x128xf32>
    %cst_44 = arith.constant dense<0.000000e+00> : vector<128xf32>
    %112 = vector.multi_reduction <add>, %109, %cst_44 [0] : vector<32x128xf32> to vector<128xf32>
    %113 = vector.shape_cast %112 : vector<128xf32> to vector<1x128xf32>
    %cst_45 = arith.constant 3.200000e+01 : f32
    %114 = vector.broadcast %cst_45 : f32 to vector<1x128xf32>
    %115 = arith.divf %113, %114 : vector<1x128xf32>
    %116 = vector.broadcast %115 : vector<1x128xf32> to vector<32x128xf32>
    %117 = arith.subf %109, %116 : vector<32x128xf32>
    %118 = arith.mulf %117, %117 : vector<32x128xf32>
    %cst_46 = arith.constant dense<0.000000e+00> : vector<128xf32>
    %119 = vector.multi_reduction <add>, %118, %cst_46 [0] : vector<32x128xf32> to vector<128xf32>
    %120 = vector.shape_cast %119 : vector<128xf32> to vector<1x128xf32>
    %cst_47 = arith.constant 3.200000e+01 : f32
    %121 = vector.broadcast %cst_47 : f32 to vector<1x128xf32>
    %122 = arith.divf %120, %121 : vector<1x128xf32>
    %123 = vector.broadcast %115 : vector<1x128xf32> to vector<32x128xf32>
    %124 = arith.subf %109, %123 : vector<32x128xf32>
    %cst_48 = arith.constant 9.99999974E-6 : f32
    %125 = vector.broadcast %cst_48 : f32 to vector<1x128xf32>
    %126 = arith.addf %122, %125 : vector<1x128xf32>
    %127 = math.rsqrt %126 : vector<1x128xf32>
    %128 = vector.broadcast %127 : vector<1x128xf32> to vector<32x128xf32>
    %129 = arith.mulf %124, %128 : vector<32x128xf32>
    %130 = vector.broadcast %110 : vector<1x128xf32> to vector<32x128xf32>
    %131 = arith.mulf %129, %130 : vector<32x128xf32>
    %132 = vector.broadcast %111 : vector<1x128xf32> to vector<32x128xf32>
    %133 = arith.addf %131, %132 : vector<32x128xf32>
    %134 = arith.addf %69, %133 : vector<32x128xf32>
    %c0_49 = arith.constant 0 : index
    %c0_50 = arith.constant 0 : index
    %135 = vector.load %arg15[%c0_49, %c0_50] : memref<32x128xf32, #tpu.memory_space<vmem>>, vector<32x128xf32>
    tpu.vector_store %arg15[%c0_49, %c0_50], %134 {strides = array<i32>} : memref<32x128xf32, #tpu.memory_space<vmem>>, vector<32x128xf32>,
    %c1_i32 = arith.constant 1 : i32
    %136 = arith.cmpi eq, %arg0, %c1_i32 : i32
    %137 = arith.extui %136 : i1 to i32
    %c0_i32_51 = arith.constant 0 : i32
    %138 = arith.cmpi ne, %137, %c0_i32_51 : i32
    scf.if %138 {
      %139 = tpu.iota {dimensions = array<i32: 0>} : vector<8x32xi32>
      %c0_52 = arith.constant 0 : index
      %c0_53 = arith.constant 0 : index
      %140 = vector.load %arg6[%c0_52, %c0_53] : memref<1x32xi32, #tpu.memory_space<vmem>>, vector<1x32xi32>
      %141 = vector.broadcast %140 : vector<1x32xi32> to vector<8x32xi32>
      %142 = arith.cmpi eq, %139, %141 : vector<8x32xi32>
      %143 = arith.extui %142 : vector<8x32xi1> to vector<8x32xi32>
      %144 = arith.sitofp %143 : vector<8x32xi32> to vector<8x32xf32>
      %c0_54 = arith.constant 0 : index
      %c0_55 = arith.constant 0 : index
      %145 = vector.load %arg15[%c0_54, %c0_55] : memref<32x128xf32, #tpu.memory_space<vmem>>, vector<32x128xf32>
      %cst_56 = arith.constant dense<0.000000e+00> : vector<8x128xf32>
      %146 = tpu.matmul %144, %145, %cst_56 {dimension_numbers = #tpu.dot_dimension_numbers<[1], [0], [0], [1], [0, 0, 1, 1], [], []>} : vector<8x32xf32>, vector<32x128xf32>, vector<8x128xf32> -> vector<8x128xf32>
      %c0_57 = arith.constant 0 : index
      %c0_58 = arith.constant 0 : index
      %147 = vector.load %arg12[%c0_57, %c0_58] : memref<128x128xf32, #tpu.memory_space<vmem>>, vector<128x128xf32>
      %cst_59 = arith.constant dense<0.000000e+00> : vector<8x128xf32>
      %148 = tpu.matmul %146, %147, %cst_59 {dimension_numbers = #tpu.dot_dimension_numbers<[1], [0], [0], [1], [0, 0, 1, 1], [], []>} : vector<8x128xf32>, vector<128x128xf32>, vector<8x128xf32> -> vector<8x128xf32>
      %c0_60 = arith.constant 0 : index
      %c0_61 = arith.constant 0 : index
      %149 = vector.load %arg13[%c0_60, %c0_61] : memref<1x128xf32, #tpu.memory_space<vmem>>, vector<1x128xf32>
      %150 = vector.broadcast %149 : vector<1x128xf32> to vector<8x128xf32>
      %151 = arith.addf %148, %150 : vector<8x128xf32>
      %c0_62 = arith.constant 0 : index
      %c0_63 = arith.constant 0 : index
      %152 = vector.load %arg14[%c0_62, %c0_63] : memref<8x128xf32, #tpu.memory_space<vmem>>, vector<8x128xf32>
      tpu.vector_store %arg14[%c0_62, %c0_63], %151 {strides = array<i32>} : memref<8x128xf32, #tpu.memory_space<vmem>>, vector<8x128xf32>,
    } else {
    }
    return
  }
  func.func @transform_0(%arg0: i32) -> (i32, i32) {
    %c0_i32 = arith.constant 0 : i32
    %c0_i32_0 = arith.constant 0 : i32
    %c0_i32_1 = arith.constant 0 : i32
    return %c0_i32, %c0_i32_0 : i32, i32
  }
  func.func @transform_1(%arg0: i32) -> (i32, i32) {
    %c0_i32 = arith.constant 0 : i32
    %c0_i32_0 = arith.constant 0 : i32
    %c0_i32_1 = arith.constant 0 : i32
    return %c0_i32, %c0_i32_0 : i32, i32
  }
  func.func @transform_2(%arg0: i32) -> (i32, i32) {
    %c0_i32 = arith.constant 0 : i32
    %c0_i32_0 = arith.constant 0 : i32
    %c0_i32_1 = arith.constant 0 : i32
    return %c0_i32, %c0_i32_0 : i32, i32
  }
  func.func @transform_3(%arg0: i32) -> (i32, i32) {
    %c0_i32 = arith.constant 0 : i32
    %c0_i32_0 = arith.constant 0 : i32
    %c0_i32_1 = arith.constant 0 : i32
    return %c0_i32, %c0_i32_0 : i32, i32
  }
  func.func @transform_4(%arg0: i32) -> (i32, i32) {
    %c0_i32 = arith.constant 0 : i32
    %c0_i32_0 = arith.constant 0 : i32
    %c0_i32_1 = arith.constant 0 : i32
    return %c0_i32, %c0_i32_0 : i32, i32
  }
  func.func @transform_5(%arg0: i32) -> (i32, i32) {
    %c0_i32 = arith.constant 0 : i32
    %c0_i32_0 = arith.constant 0 : i32
    %c0_i32_1 = arith.constant 0 : i32
    return %c0_i32, %c0_i32_0 : i32, i32
  }
  func.func @transform_6(%arg0: i32) -> (i32, i32) {
    %c0_i32 = arith.constant 0 : i32
    %c0_i32_0 = arith.constant 0 : i32
    %c0_i32_1 = arith.constant 0 : i32
    return %c0_i32, %c0_i32_0 : i32, i32
  }
  func.func @transform_7(%arg0: i32) -> (i32, i32) {
    %c0_i32 = arith.constant 0 : i32
    %c0_i32_0 = arith.constant 0 : i32
    %c0_i32_1 = arith.constant 0 : i32
    return %c0_i32, %c0_i32_0 : i32, i32
  }
  func.func @transform_8(%arg0: i32) -> (i32, i32) {
    %c0_i32 = arith.constant 0 : i32
    %c0_i32_0 = arith.constant 0 : i32
    %c0_i32_1 = arith.constant 0 : i32
    return %c0_i32, %c0_i32_0 : i32, i32
  }
  func.func @transform_9(%arg0: i32) -> (i32, i32, i32, i32) {
    %c0_i32 = arith.constant 0 : i32
    %c0_i32_0 = arith.constant 0 : i32
    %c0_i32_1 = arith.constant 0 : i32
    %c0_i32_2 = arith.constant 0 : i32
    return %arg0, %c0_i32, %c0_i32_0, %c0_i32_1 : i32, i32, i32, i32
  }
  func.func @transform_10(%arg0: i32) -> (i32, i32, i32) {
    %c0_i32 = arith.constant 0 : i32
    %c0_i32_0 = arith.constant 0 : i32
    %c0_i32_1 = arith.constant 0 : i32
    return %arg0, %c0_i32, %c0_i32_0 : i32, i32, i32
  }
  func.func @transform_11(%arg0: i32) -> (i32, i32) {
    %c0_i32 = arith.constant 0 : i32
    %c0_i32_0 = arith.constant 0 : i32
    %c0_i32_1 = arith.constant 0 : i32
    return %c0_i32, %c0_i32_0 : i32, i32
  }
  func.func @transform_12(%arg0: i32) -> (i32, i32) {
    %c0_i32 = arith.constant 0 : i32
    %c0_i32_0 = arith.constant 0 : i32
    %c0_i32_1 = arith.constant 0 : i32
    return %c0_i32, %c0_i32_0 : i32, i32
  }
  func.func @transform_13(%arg0: i32) -> (i32, i32) {
    %c0_i32 = arith.constant 0 : i32
    %c0_i32_0 = arith.constant 0 : i32
    %c0_i32_1 = arith.constant 0 : i32
    return %c0_i32, %c0_i32_0 : i32, i32
  }
}

</mosaic_0001>

<bundles_post_ra>
// kernel: n2gnn_forward.1
= control target key start
LH: loop header
LB: loop body
LE: loop exit
PB: predicated region body
PF: predicated region fallthrough
CT: control target
= control target key end

     0   :  { %18 = vsyncpa [#allocation6], 0  ;;  %s1691_s25 = smov 0   ;;  %s2083_s0 = inlined_call_operand.vmem [shape: f32[32,16], index: 0, kind: input, shape index: {}]   ;;  %s2084_s1 = inlined_call_operand.vmem [shape: s32[32,1], index: 1, kind: input, shape index: {}]   ;;  %s2085_s2 = inlined_call_operand.vmem [shape: s32[64,1], index: 2, kind: input, shape index: {}]   ;;  %s2086_s3 = inlined_call_operand.vmem [shape: s32[1,64], index: 3, kind: input, shape index: {}]   ;;  %s2087_s4 = inlined_call_operand.vmem [shape: s32[32,1], index: 4, kind: input, shape index: {}]   ;;  %s2088_s5 = inlined_call_operand.vmem [shape: s32[1,32], index: 5, kind: input, shape index: {}]   ;;  %s2089_s6 = inlined_call_operand.vmem [shape: f32[16,128], index: 6, kind: input, shape index: {}]   ;;  %s2090_s7 = inlined_call_operand.vmem [shape: f32[1,128], index: 7, kind: input, shape index: {}]   ;;  %s2091_s8 = inlined_call_operand.vmem [shape: f32[16,128], index: 8, kind: input, shape index: {}]   ;;  %s2092_s9 = inlined_call_operand.vmem [shape: f32[2,4,128,128], index: 9, kind: input, shape index: {}]   ;;  %s2093_s10 = inlined_call_operand.vmem [shape: f32[2,12,128], index: 10, kind: input, shape index: {}]   ;;  %s2094_s11 = inlined_call_operand.vmem [shape: f32[128,128], index: 11, kind: input, shape index: {}]   ;;  %s2095_s12 = inlined_call_operand.vmem [shape: f32[1,128], index: 12, kind: input, shape index: {}]   ;;  %s2096_s13 = inlined_call_operand.hbm [shape: f32[8,128], index: 13, kind: output, shape index: {}]  }
   0x1 LB: > { %s1697_s26 = sadd.s32 4294967295, %s1613_s25   ;;  %p1415_p0 = scmp.ge.s32.totalorder %s1613_s25, 1  ;;  %s1613_s25 = sphi %s1691_s25, %s24_s25  }
   0x2   : > { %p393_p1 = scmp.lt.s32.totalorder %s1613_s25, 3 }
   0x4   : > { %p394_p2 = pnand %p1415_p0, %p393_p1 }
   0x5   : > { %p437_p3 = scmp.lt.s32.totalorder (!%p394_p2), %s1697_s26, 1  ;;  %p1420_p4 = scmp.ne.s32.totalorder (!%p394_p2), %s1697_s26, 0 }
   0x6   : > { %397 = sbr.rel (%p394_p2) target bundleno = 1176 (0x498), region = 72 }
   0xb   : > { %s438_s27 = scalar_select %p437_p3, %s1697_s26, 1 }
   0xc   : > { %450 = sbr.rel (%p1420_p4) target bundleno = 308 (0x134), region = 76 }
   0xd   : > { %s1528_s28 = sshll.u32 %s438_s27, 9  ;;  %s1529_s29 = sshll.u32 %s438_s27, 4 }
   0xe   : > { %s1706_s15 = scalar_lea.vmem %s2092_s9, %s1528_s28  ;;  %s1711_s18 = scalar_lea.vmem %s2093_s10, %s1529_s29 }
  0x11   : > { %v587_v0 = vld [vmem:[%s2085_s2 + $0x18] sm:$0xff]  ;;  %v589_v1 = vld [vmem:[%s2085_s2 + $0x28] sm:$0xff]  ;;  %v1615_v3 = vmov 0   ;;  %v586_v4 = vld [vmem:[%s2085_s2 + $0x10] sm:$0xff]  ;;  %vm461_vm0 = vcmask 130048   ;;  %v503_v26 = vlaneseq  ;;  %v1616_v34 = vmov 1.0  }
  0x12   : > { %v591_v2 = vld [vmem:[%s2085_s2 + $0x38] sm:$0xff]  ;;  %1560 = vset.pattern.permute.xlu2 %v1615_v3  ;;  %1559 = vset.pattern.permute.xlu1 %v1615_v3  ;;  %v588_v5 = vld [vmem:[%s2085_s2 + $0x20] sm:$0xff]  ;;  %v590_v6 = vld [vmem:[%s2085_s2 + $0x30] sm:$0xff]  ;;  %v1617_v36 = vmov 0.0   ;;  %vm713_vm5 = vcmask 261120   ;;  %vm671_vm14 = vcmask 523264  }
  0x13   : > { %1558 = vset.pattern.permute.xlu0 %v1615_v3  ;;  %602 = vperm.xlu2 %1560, %v587_v0   ;;  %v584_v7 = vld [vmem:[%s2085_s2] sm:$0xff]  ;;  %v585_v8 = vld [vmem:[%s2085_s2 + $0x8] sm:$0xff]  ;;  %v508_v10 = vld [vmem:[%s2084_s1 + $0x18] sm:$0xff]  ;;  %v1782_v27 = vshrl.u32 %v503_v26, 7  ;;  %v1784_v28 = vand.u32 127, %v503_v26 }
  0x14   : > { %608 = vperm.xlu1 %1559, %v589_v1   ;;  %614 = vperm.xlu0 %1558, %v591_v2   ;;  %v505_v9 = vld [vmem:[%s2084_s1] sm:$0xff]  ;;  %v507_v11 = vld [vmem:[%s2084_s1 + $0x10] sm:$0xff]  ;;  %v506_v12 = vld [vmem:[%s2084_s1 + $0x8] sm:$0xff] }
  0x15   : > { %v720_v13 = vld [vmem:[%s2087_s4 + $0x10] sm:$0xff]  ;;  %v719_v14 = vld [vmem:[%s2087_s4 + $0x8] sm:$0xff]  ;;  %v718_v15 = vld [vmem:[%s2087_s4] sm:$0xff]  ;;  %v643_v32 = vadd.s32 16, %v1782_v27  ;;  %v642_v43 = vadd.s32 8, %v1782_v27  ;;  %v644_v54 = vadd.s32 24, %v1782_v27 }
  0x16   : > { %v721_v16 = vld [vmem:[%s2087_s4 + $0x18] sm:$0xff]  ;;  %v456_v18 = vld [vmem:[%s2089_s6 + $0x8] sm:$0xff]  ;;  %v455_v21 = vld [vmem:[%s2089_s6] sm:$0xff] }
  0x17   : > { %488 = vmatpush.msra.mxu0 %v456_v18  ;;  %v534_v19 = vld [vmem:[%s2091_s8 + $0x8] sm:$0xff]  ;;  %v451_v22 = vld [vmem:[%s2083_s0] sm:$0xff]  ;;  %v453_v33 = vld [vmem:[%s2083_s0 + $0x10] sm:$0xff]  ;;  %vm661_vm2 = vcmp.eq.s32.totalorder %v643_v32, %v1784_v28 }
  0x18   : > { %561 = vmatpush.msra.mxu1 %v534_v19  ;;  %v533_v23 = vld [vmem:[%s2091_s8] sm:$0xff]  ;;  %v452_v25 = vld [vmem:[%s2083_s0 + $0x8] sm:$0xff]  ;;  %v1796_v37 = vsel %vm661_vm2, 1.0, %v1617_v36  ;;  %v454_v40 = vld [vmem:[%s2083_s0 + $0x18] sm:$0xff] }
  0x19   : > { %489 = vmatpush.msra.mxu0 %v455_v21  ;;  %v1561_v44 = vld [vmem:[%s2086_s3] ss:$0 sm:$0xff] }
  0x1a   : > { %1421 = vmatmul.msk.f32.vlgmr.msra.gmra.mxu0 %vm461_vm0, %v451_v22  ;;  %562 = vmatpush.msra.mxu1 %v533_v23  ;;  %vm648_vm11 = vcmp.eq.s32.totalorder %v642_v43, %v1561_v44  ;;  %vm647_vm12 = vcmp.eq.s32.totalorder %v1782_v27, %v1561_v44  ;;  %vm649_vm2 = vcmp.eq.s32.totalorder %v643_v32, %v1561_v44 }
  0x1b   : > { %599 = vperm.xlu2 %1560, %v586_v4   ;;  %v1442_v48 = vsel %vm648_vm11, 1.0, %v1617_v36  ;;  %v1441_v49 = vsel %vm647_vm12, 1.0, %v1617_v36  ;;  %v1443_v53 = vsel %vm649_vm2, 1.0, %v1617_v36 }
  0x1c   : > { %605 = vperm.xlu1 %1559, %v588_v5   ;;  %611 = vperm.xlu0 %1558, %v590_v6  }
  0x22   : > { %1422 = vmatmul.msk.f32.gmra.mxu0 %vm461_vm0, %v452_v25 }
  0x23   : > { %593 = vperm.xlu2 %1560, %v584_v7   ;;  %v1562_v7 = vld [vmem:[%s2090_s7] ss:$0 sm:$0xff] }
  0x24   : > { %596 = vperm.xlu1 %1559, %v585_v8   ;;  %510 = vperm.xlu0 %1558, %v505_v9  }
  0x2a   : > { %1423 = vmatmul.msk.f32.gmra.mxu0 %vm461_vm0, %v453_v33 }
  0x2b   : > { %519 = vperm.xlu2 %1560, %v508_v10  }
  0x2c   : > { %516 = vperm.xlu1 %1559, %v507_v11   ;;  %513 = vperm.xlu0 %1558, %v506_v12  }
  0x32   : > { %1424 = vmatmul.msk.f32.gmra.mxu0 %vm461_vm0, %v454_v40 }
  0x33   : > { %729 = vperm.xlu2 %1560, %v720_v13  }
  0x34   : > { %726 = vperm.xlu1 %1559, %v719_v14   ;;  %723 = vperm.xlu0 %1558, %v718_v15  }
  0x3c   : > { %732 = vperm.xlu0 %1558, %v721_v16  }
  0x6d   : > { %v603_v17 = vpop.permute.xlu2 %602 }
  0x6e   : > { %vm619_vm8 = vcmp.eq.s32.totalorder %v1784_v28, %v603_v17 }
  0x75   : > { %v600_v20 = vpop.permute.xlu2 %599 }
  0x76   : > { %vm618_vm9 = vcmp.eq.s32.totalorder %v1784_v28, %v600_v20 }
  0x7d   : > { %v594_v24 = vpop.permute.xlu2 %593 }
  0x7e   : > { %vm616_vm15 = vcmp.eq.s32.totalorder %v1784_v28, %v594_v24 }
  0x85   : > { %v1786_v29 = vpop.permute.xlu2 %519 }
  0x86   : > { %v609_v30 = vpop.permute.xlu1 %608  ;;  %v615_v31 = vpop.permute.xlu0 %614  ;;  %vm524_vm11 = vcmp.eq.s32.totalorder %v1784_v28, %v1786_v29 }
  0x87   : > { %vm623_vm1 = vcmp.eq.s32.totalorder %v1784_v28, %v615_v31  ;;  %vm621_vm6 = vcmp.eq.s32.totalorder %v1784_v28, %v609_v30  ;;  %v1428_v3 = vsel %vm524_vm11, 1.0, %v1617_v36 }
  0x88   : > { %1449 = vmatpush.msk.msra.mxu2 %vm623_vm1, %v1616_v34  ;;  %1530 = vmatpush.msk.msra.mxu3 %vm623_vm1, %v1616_v34 }
  0x8d   : > { %v730_v35 = vpop.permute.xlu2 %729 }
  0x8e   : > { %v606_v38 = vpop.permute.xlu1 %605  ;;  %v612_v39 = vpop.permute.xlu0 %611  ;;  %vm736_vm3 = vcmp.eq.s32.totalorder %v1784_v28, %v730_v35 }
  0x8f   : > { %vm622_vm4 = vcmp.eq.s32.totalorder %v1784_v28, %v612_v39  ;;  %v1463_v41 = vsel %vm736_vm3, 1.0, %v1617_v36  ;;  %vm620_vm7 = vcmp.eq.s32.totalorder %v1784_v28, %v606_v38  ;;  %vm660_vm3 = vcmp.eq.s32.totalorder %v642_v43, %v1784_v28 }
  0x90   : > { %1450 = vmatpush.msk.msra.mxu2 %vm622_vm4, %v1616_v34  ;;  %1531 = vmatpush.msk.msra.mxu3 %vm622_vm4, %v1616_v34  ;;  %v748_v42 = vadd.f32 %v1463_v41, %v1796_v37  ;;  %vm659_vm4 = vcmp.eq.s32.totalorder %v1782_v27, %v1784_v28  ;;  %v1446_v57 = vsel %vm660_vm3, 1.0, %v1617_v36 }
  0x91   : > { %v1445_v58 = vsel %vm659_vm4, 1.0, %v1617_v36 }
  0x92   : > { %1451 = vmatpush.msk.msra.mxu2 %vm621_vm6, %v1616_v34  ;;  %1532 = vmatpush.msk.msra.mxu3 %vm621_vm6, %v1616_v34  ;;  %752 = vst.msk [vmem:[#allocation4 + $0x10] sm:$0xff] %vm713_vm5, %v748_v42 }
  0x94   : > { %1452 = vmatpush.msk.msra.mxu2 %vm620_vm7, %v1616_v34  ;;  %1533 = vmatpush.msk.msra.mxu3 %vm620_vm7, %v1616_v34 }
  0x96   : > { %v597_v45 = vpop.permute.xlu1 %596  ;;  %v511_v46 = vpop.permute.xlu0 %510  ;;  %1453 = vmatpush.msk.msra.mxu2 %vm619_vm8, %v1616_v34  ;;  %1534 = vmatpush.msk.msra.mxu3 %vm619_vm8, %v1616_v34 }
  0x97   : > { %vm521_vm10 = vcmp.eq.s32.totalorder %v1784_v28, %v511_v46  ;;  %vm617_vm13 = vcmp.eq.s32.totalorder %v1784_v28, %v597_v45  ;;  %v491_v6 = vpop.f32.mrf.mxu0 }
  0x98   : > { %v1425_v47 = vsel %vm521_vm10, 1.0, %v1617_v36  ;;  %1454 = vmatpush.msk.msra.mxu2 %vm618_vm9, %v1616_v34  ;;  %1535 = vmatpush.msk.msra.mxu3 %vm618_vm9, %v1616_v34  ;;  %vm650_vm9 = vcmp.eq.s32.totalorder %v644_v54, %v1561_v44  ;;  %vm662_vm10 = vcmp.eq.s32.totalorder %v644_v54, %v1784_v28  ;;  %v492_v8 = vadd.f32 %v1562_v7, %v491_v6 }
  0x99   : > { %1429 = vmatmul.msk.f32.vlgmr.msra.gmra.mxu1 %vm461_vm0, %v1425_v47  ;;  %v1444_v0 = vsel %vm650_vm9, 1.0, %v1617_v36  ;;  %v1448_v2 = vsel %vm662_vm10, 1.0, %v1617_v36 }
  0x9a   : > { %1455 = vmatpush.msk.msra.mxu2 %vm617_vm13, %v1616_v34  ;;  %1536 = vmatpush.msk.msra.mxu3 %vm617_vm13, %v1616_v34 }
  0x9c   : > { %1456 = vmatpush.msk.msra.mxu2 %vm616_vm15, %v1616_v34  ;;  %1537 = vmatpush.msk.msra.mxu3 %vm616_vm15, %v1616_v34 }
  0x9d   : > { %1458 = vmatmul.msk.f32.vlgmr.msra.gmra.mxu3 %vm671_vm14, %v1442_v48  ;;  %1457 = vmatmul.msk.f32.vlgmr.msra.gmra.mxu2 %vm671_vm14, %v1441_v49 }
  0x9e   : > { %v517_v50 = vpop.permute.xlu1 %516  ;;  %v514_v51 = vpop.permute.xlu0 %513 }
  0x9f   : > { %vm522_vm1 = vcmp.eq.s32.totalorder %v1784_v28, %v514_v51  ;;  %vm523_vm6 = vcmp.eq.s32.totalorder %v1784_v28, %v517_v50  ;;  %v494_v9 = vpop.f32.mrf.mxu0 }
  0xa0   : > { %v1426_v52 = vsel %vm522_vm1, 1.0, %v1617_v36  ;;  %v1427_v59 = vsel %vm523_vm6, 1.0, %v1617_v36  ;;  %v495_v12 = vadd.f32 %v1562_v7, %v494_v9 }
  0xa1   : > { %1430 = vmatmul.msk.f32.gmra.mxu1 %vm461_vm0, %v1426_v52 }
  0xa5   : > { %1459 = vmatmul.msk.f32.gmra.mxu3 %vm671_vm14, %v1443_v53 }
  0xa6   : > { %v727_v55 = vpop.permute.xlu1 %726  ;;  %v724_v56 = vpop.permute.xlu0 %723 }
  0xa7   : > { %vm735_vm7 = vcmp.eq.s32.totalorder %v1784_v28, %v727_v55  ;;  %vm734_vm8 = vcmp.eq.s32.totalorder %v1784_v28, %v724_v56  ;;  %v497_v14 = vpop.f32.mrf.mxu0 }
  0xa8   : > { %v1462_v60 = vsel %vm735_vm7, 1.0, %v1617_v36  ;;  %v1461_v61 = vsel %vm734_vm8, 1.0, %v1617_v36  ;;  %v498_v20 = vadd.f32 %v1562_v7, %v497_v14 }
  0xa9   : > { %1431 = vmatmul.msk.f32.gmra.mxu1 %vm461_vm0, %v1427_v59  ;;  %v747_v62 = vadd.f32 %v1462_v60, %v1446_v57  ;;  %v746_v63 = vadd.f32 %v1461_v61, %v1445_v58 }
  0xab   : > { %751 = vst.msk [vmem:[#allocation4 + $0x8] sm:$0xff] %vm713_vm5, %v747_v62 }
  0xac   : > { %750 = vst.msk [vmem:[#allocation4] sm:$0xff] %vm713_vm5, %v746_v63 }
  0xad   : > { %1460 = vmatmul.msk.f32.gmra.mxu3 %vm671_vm14, %v1444_v0 }
  0xae   : > { %v733_v1 = vpop.permute.xlu0 %732 }
  0xaf   : > { %vm737_vm12 = vcmp.eq.s32.totalorder %v1784_v28, %v733_v1  ;;  %v500_v24 = vpop.f32.mrf.mxu0 }
  0xb0   : > { %v1464_v4 = vsel %vm737_vm12, 1.0, %v1617_v36  ;;  %v501_v26 = vadd.f32 %v1562_v7, %v500_v24 }
  0xb1   : > { %1432 = vmatmul.msk.f32.gmra.mxu1 %vm461_vm0, %v1428_v3  ;;  %v749_v5 = vadd.f32 %v1464_v4, %v1448_v2 }
  0xb3   : > { %753 = vst.msk [vmem:[#allocation4 + $0x18] sm:$0xff] %vm713_vm5, %v749_v5 }
 0x116   : > { %v564_v10 = vpop.f32.mrf.mxu1 }
 0x117   : > { %v576_v11 = vadd.f32 %v564_v10, %v492_v8 }
 0x119   : > { %580 = vst [vmem:[#allocation2 + $0x10] sm:$0xff] %v576_v11 }
 0x11e   : > { %v567_v13 = vpop.f32.mrf.mxu1 }
 0x11f   : > { %v577_v15 = vadd.f32 %v567_v13, %v495_v12 }
 0x120   : > { %v704_v16 = vpop.f32.mrf.mxu3  ;;  %v701_v17 = vpop.f32.mrf.mxu2 }
 0x121   : > { %581 = vst [vmem:[#allocation2] sm:$0xff] %v577_v15  ;;  %v705_v18 = vadd.f32 %v1446_v57, %v704_v16  ;;  %v702_v19 = vadd.f32 %v1445_v58, %v701_v17 }
 0x123   : > { %715 = vst.msk [vmem:[#allocation3 + $0x8] sm:$0xff] %vm713_vm5, %v705_v18 }
 0x124   : > { %714 = vst.msk [vmem:[#allocation3] sm:$0xff] %vm713_vm5, %v702_v19 }
 0x126   : > { %v570_v21 = vpop.f32.mrf.mxu1 }
 0x127   : > { %v578_v22 = vadd.f32 %v570_v21, %v498_v20 }
 0x128   : > { %v707_v23 = vpop.f32.mrf.mxu3 }
 0x129   : > { %582 = vst [vmem:[#allocation2 + $0x18] sm:$0xff] %v578_v22  ;;  %v708_v25 = vadd.f32 %v1796_v37, %v707_v23 }
 0x12b   : > { %716 = vst.msk [vmem:[#allocation3 + $0x10] sm:$0xff] %vm713_vm5, %v708_v25 }
 0x12e   : > { %v573_v27 = vpop.f32.mrf.mxu1 }
 0x12f   : > { %v579_v28 = vadd.f32 %v573_v27, %v501_v26 }
 0x130   : > { %v710_v29 = vpop.f32.mrf.mxu3 }
 0x131   : > { %583 = vst [vmem:[#allocation2 + $0x8] sm:$0xff] %v579_v28  ;;  %v711_v30 = vadd.f32 %v1448_v2, %v710_v29 }
 0x133   : > { %717 = vst.msk [vmem:[#allocation3 + $0x18] sm:$0xff] %vm713_vm5, %v711_v30 }
 0x134 PF: > { %v756_v32 = vld [vmem:[#allocation2 + $0x18] sm:$0xff]  ;;  %v755_v33 = vld [vmem:[#allocation2] sm:$0xff]  ;;  %v754_v34 = vld [vmem:[#allocation2 + $0x10] sm:$0xff]  ;;  %vm764_vm0 = vcmask 261120   ;;  %v1618_v22 = vmov 32.0   ;;  %p1521_p5 = scmp.ne.s32.totalorder %s1697_s26, 1 }
 0x135   : > { %v821_v35 = vld [vmem:[%s1706_s15 + $0x78] sm:$0xff]  ;;  %v760_v36 = vld [vmem:[#allocation3] sm:$0xff]  ;;  %v820_v38 = vld [vmem:[%s1706_s15 + $0x70] sm:$0xff]  ;;  %1563 = vrcp.f32 %v1618_v22 }
 0x136   : > { %v1016_v37 = vld [vmem:[#allocation4] sm:$0xff]  ;;  %823 = vmatpush.msra.mxu1 %v821_v35  ;;  %v1504_v39 = vld [vmem:[%s1706_s15 + $0x178] sm:$0xff]  ;;  %v819_v40 = vld [vmem:[%s1706_s15 + $0x68] sm:$0xff] }
 0x137   : > { %v1503_v41 = vld [vmem:[%s1706_s15 + $0x170] sm:$0xff]  ;;  %v818_v42 = vld [vmem:[%s1706_s15 + $0x60] sm:$0xff]  ;;  %v1502_v43 = vld [vmem:[%s1706_s15 + $0x168] sm:$0xff] }
 0x138   : > { %v757_v31 = vld [vmem:[#allocation2 + $0x8] sm:$0xff]  ;;  %824 = vmatpush.msra.mxu1 %v820_v38  ;;  %v817_v44 = vld [vmem:[%s1706_s15 + $0x58] sm:$0xff]  ;;  %v1501_v45 = vld [vmem:[%s1706_s15 + $0x160] sm:$0xff] }
 0x139   : > { %789 = vmatpush.msra.mxu0 %v757_v31  ;;  %1044 = vmatpush.msra.mxu3 %v757_v31  ;;  %v761_v46 = vld [vmem:[#allocation3 + $0x8] sm:$0xff]  ;;  %v816_v48 = vld [vmem:[%s1706_s15 + $0x50] sm:$0xff]  ;;  %v1500_v49 = vld [vmem:[%s1706_s15 + $0x158] sm:$0xff] }
 0x13a   : > { %825 = vmatpush.msra.mxu1 %v819_v40  ;;  %v1017_v47 = vld [vmem:[#allocation4 + $0x8] sm:$0xff]  ;;  %v1499_v51 = vld [vmem:[%s1706_s15 + $0x150] sm:$0xff]  ;;  %v814_v52 = vld [vmem:[%s1706_s15 + $0x40] sm:$0xff] }
 0x13b   : > { %790 = vmatpush.msra.mxu0 %v756_v32  ;;  %1045 = vmatpush.msra.mxu3 %v756_v32  ;;  %v815_v50 = vld [vmem:[%s1706_s15 + $0x48] sm:$0xff]  ;;  %v813_v54 = vld [vmem:[%s1706_s15 + $0x38] sm:$0xff]  ;;  %v1497_v55 = vld [vmem:[%s1706_s15 + $0x140] sm:$0xff]  ;;  %v1564_v27 = vpop.eup %1563 }
 0x13c   : > { %826 = vmatpush.msra.mxu1 %v818_v42  ;;  %v1498_v53 = vld [vmem:[%s1706_s15 + $0x148] sm:$0xff]  ;;  %v762_v56 = vld [vmem:[#allocation3 + $0x10] sm:$0xff]  ;;  %v1496_v59 = vld [vmem:[%s1706_s15 + $0x138] sm:$0xff]  ;;  %v862_v32 = vmul.f32 32.0, %v1564_v27  ;;  %vm866_vm5 = vweird.f32 %v1564_v27 }
 0x13d   : > { %791 = vmatpush.msra.mxu0 %v755_v33  ;;  %1046 = vmatpush.msra.mxu3 %v755_v33  ;;  %v1018_v57 = vld [vmem:[#allocation4 + $0x10] sm:$0xff]  ;;  %v811_v60 = vld [vmem:[%s1706_s15 + $0x28] sm:$0xff]  ;;  %v810_v62 = vld [vmem:[%s1706_s15 + $0x20] sm:$0xff] }
 0x13e   : > { %827 = vmatpush.msra.mxu1 %v817_v44  ;;  %v812_v58 = vld [vmem:[%s1706_s15 + $0x30] sm:$0xff]  ;;  %v1494_v63 = vld [vmem:[%s1706_s15 + $0x128] sm:$0xff]  ;;  %v809_v0 = vld [vmem:[%s1706_s15 + $0x18] sm:$0xff] }
 0x13f   : > { %792 = vmatpush.msra.mxu0 %v754_v34  ;;  %1047 = vmatpush.msra.mxu3 %v754_v34  ;;  %v1495_v61 = vld [vmem:[%s1706_s15 + $0x130] sm:$0xff]  ;;  %v1493_v1 = vld [vmem:[%s1706_s15 + $0x120] sm:$0xff]  ;;  %v763_v2 = vld [vmem:[#allocation3 + $0x18] sm:$0xff] }
 0x140   : > { %1465 = vmatmul.msk.f32.vlgmr.msra.gmra.mxu0 %vm764_vm0, %v760_v36  ;;  %1485 = vmatmul.msk.f32.vlgmr.msra.gmra.mxu3 %vm764_vm0, %v1016_v37  ;;  %v1019_v3 = vld [vmem:[#allocation4 + $0x18] sm:$0xff]  ;;  %v808_v4 = vld [vmem:[%s1706_s15 + $0x10] sm:$0xff]  ;;  %v807_v6 = vld [vmem:[%s1706_s15 + $0x8] sm:$0xff] }
 0x141   : > { %1079 = vmatpush.msrb.mxu0 %v1504_v39  ;;  %828 = vmatpush.msra.mxu1 %v816_v48  ;;  %v1492_v5 = vld [vmem:[%s1706_s15 + $0x118] sm:$0xff]  ;;  %v806_v7 = vld [vmem:[%s1706_s15] sm:$0xff]  ;;  %v1491_v8 = vld [vmem:[%s1706_s15 + $0x110] sm:$0xff]  ;;  %v863_v39 = vsub.f32 1.0, %v862_v32 }
 0x142   : > { %v1490_v9 = vld [vmem:[%s1706_s15 + $0x108] sm:$0xff]  ;;  %v1489_v10 = vld [vmem:[%s1706_s15 + $0x100] sm:$0xff]  ;;  %v1515_v22 = vld [vmem:[%s1706_s15 + $0x1d0] sm:$0xff] }
 0x143   : > { %1080 = vmatpush.msrb.mxu0 %v1503_v41  ;;  %829 = vmatpush.msra.mxu1 %v815_v50  ;;  %v1905_v23 = vld [vmem:[%s1711_s18] sm:$0xff]  ;;  %v1484_v50 = vld [vmem:[%s1706_s15 + $0xf8] sm:$0xff] }
 0x144   : > { %v822_v26 = vperm.slane %v1905_v23, 0  ;;  %v1078_v33 = vperm.slane %v1905_v23, 6  ;;  %934 = vmatpush.msra.mxu2 %v1484_v50  ;;  %v1510_v50 = vld [vmem:[%s1706_s15 + $0x1a8] sm:$0xff] }
 0x145   : > { %1081 = vmatpush.msrb.mxu0 %v1502_v43  ;;  %830 = vmatpush.msra.mxu1 %v814_v52 }
 0x147   : > { %1082 = vmatpush.msrb.mxu0 %v1501_v45  ;;  %831 = vmatpush.msra.mxu1 %v813_v54  ;;  %v864_v45 = vmul.f32 %v1564_v27, %v863_v39  ;;  %v1483_v54 = vld [vmem:[%s1706_s15 + $0xf0] sm:$0xff] }
 0x148   : > { %1466 = vmatmul.msk.f32.gmra.mxu0 %vm764_vm0, %v761_v46  ;;  %1486 = vmatmul.msk.f32.gmra.mxu3 %vm764_vm0, %v1017_v47 }
 0x149   : > { %1083 = vmatpush.msrb.mxu0 %v1500_v49  ;;  %832 = vmatpush.msra.mxu1 %v812_v58 }
 0x14a   : > { %935 = vmatpush.msra.mxu2 %v1483_v54  ;;  %v1509_v54 = vld [vmem:[%s1706_s15 + $0x1a0] sm:$0xff] }
 0x14b   : > { %1084 = vmatpush.msrb.mxu0 %v1499_v51  ;;  %833 = vmatpush.msra.mxu1 %v811_v60 }
 0x14d   : > { %1085 = vmatpush.msrb.mxu0 %v1498_v53  ;;  %834 = vmatpush.msra.mxu1 %v810_v62  ;;  %v865_v53 = vadd.f32 %v1564_v27, %v864_v45  ;;  %v1481_v62 = vld [vmem:[%s1706_s15 + $0xe0] sm:$0xff] }
 0x14f   : > { %1086 = vmatpush.msrb.mxu0 %v1497_v55  ;;  %835 = vmatpush.msra.mxu1 %v809_v0  ;;  %v1924_v60 = vsel %vm866_vm5, %v1564_v27, %v865_v53 }
 0x150   : > { %1467 = vmatmul.msk.f32.gmra.mxu0 %vm764_vm0, %v762_v56  ;;  %1487 = vmatmul.msk.f32.gmra.mxu3 %vm764_vm0, %v1018_v57  ;;  %v1482_v57 = vld [vmem:[%s1706_s15 + $0xe8] sm:$0xff] }
 0x151   : > { %1087 = vmatpush.msrb.mxu0 %v1496_v59  ;;  %836 = vmatpush.msra.mxu1 %v808_v4 }
 0x152   : > { %936 = vmatpush.msra.mxu2 %v1482_v57 }
 0x153   : > { %1088 = vmatpush.msrb.mxu0 %v1495_v61  ;;  %837 = vmatpush.msra.mxu1 %v807_v6  ;;  %v1520_v61 = vld [vmem:[%s1706_s15 + $0x1f8] sm:$0xff]  ;;  %v1479_v6 = vld [vmem:[%s1706_s15 + $0xd0] sm:$0xff] }
 0x154   : > { %1183 = vmatpush.msrb.mxu3 %v1520_v61  ;;  %937 = vmatpush.msra.mxu2 %v1481_v62  ;;  %v1507_v62 = vld [vmem:[%s1706_s15 + $0x190] sm:$0xff] }
 0x155   : > { %1089 = vmatpush.msrb.mxu0 %v1494_v63  ;;  %838 = vmatpush.msra.mxu1 %v806_v7 }
 0x157   : > { %1090 = vmatpush.msrb.mxu0 %v1493_v1  ;;  %v1519_v1 = vld [vmem:[%s1706_s15 + $0x1f0] sm:$0xff] }
 0x158   : > { %1468 = vmatmul.msk.f32.gmra.mxu0 %vm764_vm0, %v763_v2  ;;  %1488 = vmatmul.msk.f32.gmra.mxu3 %vm764_vm0, %v1019_v3  ;;  %v1480_v2 = vld [vmem:[%s1706_s15 + $0xd8] sm:$0xff] }
 0x159   : > { %1091 = vmatpush.msrb.mxu0 %v1492_v5  ;;  %1184 = vmatpush.msrb.mxu3 %v1519_v1  ;;  %v1518_v5 = vld [vmem:[%s1706_s15 + $0x1e8] sm:$0xff] }
 0x15a   : > { %938 = vmatpush.msra.mxu2 %v1480_v2 }
 0x15b   : > { %1092 = vmatpush.msrb.mxu0 %v1491_v8  ;;  %1185 = vmatpush.msrb.mxu3 %v1518_v5 }
 0x15c   : > { %939 = vmatpush.msra.mxu2 %v1479_v6 }
 0x15d   : > { %1093 = vmatpush.msrb.mxu0 %v1490_v9 }
 0x15f   : > { %1094 = vmatpush.msrb.mxu0 %v1489_v10 }
 0x1bd   : > { %v794_v11 = vpop.f32.mrf.mxu0 }
 0x1be   : > { %839 = vmatmul.f32.vlgmr.msra.gmra.mxu1 %v794_v11  ;;  %v1517_v11 = vld [vmem:[%s1706_s15 + $0x1e0] sm:$0xff] }
 0x1bf   : > { %1186 = vmatpush.msrb.mxu3 %v1517_v11 }
 0x1c3   : > { %v1049_v12 = vpop.f32.mrf.mxu3 }
 0x1c4   : > { %1095 = vmatmul.f32.vlgmr.msrb.gmra.mxu0 %v1049_v12  ;;  %v1478_v12 = vld [vmem:[%s1706_s15 + $0xc8] sm:$0xff] }
 0x1c5   : > { %v797_v13 = vpop.f32.mrf.mxu0  ;;  %940 = vmatpush.msra.mxu2 %v1478_v12 }
 0x1c6   : > { %842 = vmatmul.f32.gmra.mxu1 %v797_v13 }
 0x1cb   : > { %v1052_v14 = vpop.f32.mrf.mxu3 }
 0x1cc   : > { %1098 = vmatmul.f32.gmra.mxu0 %v1052_v14 }
 0x1cd   : > { %v800_v15 = vpop.f32.mrf.mxu0 }
 0x1ce   : > { %845 = vmatmul.f32.gmra.mxu1 %v800_v15 }
 0x1d3   : > { %v1055_v16 = vpop.f32.mrf.mxu3 }
 0x1d4   : > { %1101 = vmatmul.f32.gmra.mxu0 %v1055_v16 }
 0x1d5   : > { %v803_v17 = vpop.f32.mrf.mxu0 }
 0x1d6   : > { %848 = vmatmul.f32.gmra.mxu1 %v803_v17  ;;  %v1516_v17 = vld [vmem:[%s1706_s15 + $0x1d8] sm:$0xff] }
 0x1d7   : > { %1187 = vmatpush.msrb.mxu3 %v1516_v17 }
 0x1d9   : > { %1188 = vmatpush.msrb.mxu3 %v1515_v22  ;;  %v902_v22 = vperm.slane %v1905_v23, 1 }
 0x1db   : > { %v1058_v18 = vpop.f32.mrf.mxu3 }
 0x1dc   : > { %1104 = vmatmul.f32.gmra.mxu0 %v1058_v18  ;;  %v1477_v18 = vld [vmem:[%s1706_s15 + $0xc0] sm:$0xff] }
 0x1dd   : > { %941 = vmatpush.msra.mxu2 %v1477_v18 }
 0x23b   : > { %v840_v19 = vpop.f32.mrf.mxu1 }
 0x23c   : > { %v841_v29 = vadd.f32 %v840_v19, %v822_v26 }
 0x241   : > { %v1096_v20 = vpop.f32.mrf.mxu0 }
 0x242   : > { %v1911_v40 = vadd.f32 %v1096_v20, %v1078_v33 }
 0x243   : > { %v843_v21 = vpop.f32.mrf.mxu1 }
 0x244   : > { %v844_v28 = vadd.f32 %v843_v21, %v822_v26 }
 0x246   : > { %v852_v34 = vadd.f32 %v844_v28, %v841_v29 }
 0x249   : > { %v1099_v24 = vpop.f32.mrf.mxu0 }
 0x24a   : > { %v1909_v36 = vadd.f32 %v1099_v24, %v1078_v33  ;;  %v1476_v24 = vld [vmem:[%s1706_s15 + $0xb8] sm:$0xff] }
 0x24b   : > { %v846_v25 = vpop.f32.mrf.mxu1  ;;  %942 = vmatpush.msra.mxu2 %v1476_v24 }
 0x24c   : > { %v847_v30 = vadd.f32 %v846_v25, %v822_v26  ;;  %v1108_v43 = vadd.f32 %v1909_v36, %v1911_v40 }
 0x24e   : > { %v853_v37 = vadd.f32 %v852_v34, %v847_v30 }
 0x251   : > { %v1102_v31 = vpop.f32.mrf.mxu0 }
 0x252   : > { %v1913_v41 = vadd.f32 %v1102_v31, %v1078_v33  ;;  %v1475_v31 = vld [vmem:[%s1706_s15 + $0xb0] sm:$0xff] }
 0x253   : > { %v849_v35 = vpop.f32.mrf.mxu1  ;;  %943 = vmatpush.msra.mxu2 %v1475_v31 }
 0x254   : > { %v850_v38 = vadd.f32 %v849_v35, %v822_v26  ;;  %v1109_v47 = vadd.f32 %v1108_v43, %v1913_v41 }
 0x256   : > { %v854_v42 = vadd.f32 %v853_v37, %v850_v38  ;;  %v1474_v37 = vld [vmem:[%s1706_s15 + $0xa8] sm:$0xff] }
 0x257   : > { %944 = vmatpush.msra.mxu2 %v1474_v37  ;;  %v2000_v37 = vld [vmem:[%s1711_s18 + $0x8] sm:$0xf] }
 0x258   : > { %v855_v44 = vrot.slane %v854_v42, 4 }
 0x259   : > { %v1105_v46 = vpop.f32.mrf.mxu0 }
 0x25a   : > { %v856_v48 = vadd.f32 %v855_v44, %v854_v42  ;;  %v1918_v49 = vadd.f32 %v1105_v46, %v1078_v33  ;;  %v1473_v42 = vld [vmem:[%s1706_s15 + $0xa0] sm:$0xff]  ;;  %v1511_v46 = vld [vmem:[%s1706_s15 + $0x1b0] sm:$0xff] }
 0x25b   : > { %945 = vmatpush.msra.mxu2 %v1473_v42  ;;  %v1156_v42 = vperm.slane %v2000_v37, 0 }
 0x25c   : > { %v857_v51 = vrot.slane %v856_v48, 2  ;;  %v1110_v52 = vadd.f32 %v1109_v47, %v1918_v49  ;;  %v1472_v47 = vld [vmem:[%s1706_s15 + $0x98] sm:$0xff] }
 0x25d   : > { %946 = vmatpush.msra.mxu2 %v1472_v47 }
 0x25e   : > { %v858_v55 = vadd.f32 %v857_v51, %v856_v48  ;;  %v1111_v56 = vrot.slane %v1110_v52, 4  ;;  %v1471_v51 = vld [vmem:[%s1706_s15 + $0x90] sm:$0xff] }
 0x25f   : > { %947 = vmatpush.msra.mxu2 %v1471_v51 }
 0x260   : > { %v859_v58 = vrot.slane %v858_v55, 1  ;;  %v1112_v59 = vadd.f32 %v1111_v56, %v1110_v52 }
 0x262   : > { %v860_v63 = vadd.f32 %v859_v58, %v858_v55  ;;  %v1113_v0 = vrot.slane %v1112_v59, 2  ;;  %v1470_v55 = vld [vmem:[%s1706_s15 + $0x88] sm:$0xff]  ;;  %v1508_v58 = vld [vmem:[%s1706_s15 + $0x198] sm:$0xff] }
 0x263   : > { %948 = vmatpush.msra.mxu2 %v1470_v55 }
 0x264   : > { %v868_v3 = vmul.f32 %v1924_v60, %v860_v63  ;;  %v1114_v4 = vadd.f32 %v1113_v0, %v1112_v59  ;;  %v1469_v59 = vld [vmem:[%s1706_s15 + $0x80] sm:$0xff]  ;;  %v1506_v0 = vld [vmem:[%s1706_s15 + $0x188] sm:$0xff] }
 0x265   : > { %949 = vmatpush.msra.mxu2 %v1469_v59 }
 0x266   : > { %v1933_v7 = vsub.f32 %v841_v29, %v868_v3  ;;  %v1935_v8 = vsub.f32 %v844_v28, %v868_v3  ;;  %v1937_v9 = vsub.f32 %v847_v30, %v868_v3  ;;  %v1115_v10 = vrot.slane %v1114_v4, 1  ;;  %v1514_v30 = vld [vmem:[%s1706_s15 + $0x1c8] sm:$0xff] }
 0x267   : > { %v1941_v13 = vsub.f32 %v850_v38, %v868_v3  ;;  %1189 = vmatpush.msrb.mxu3 %v1514_v30  ;;  %v1505_v3 = vld [vmem:[%s1706_s15 + $0x180] sm:$0xff]  ;;  %v907_v30 = vperm.slane %v1905_v23, 2 }
 0x268   : > { %v873_v14 = vmul.f32 %v1933_v7, %v1933_v7  ;;  %v874_v15 = vmul.f32 %v1935_v8, %v1935_v8  ;;  %v1116_v16 = vadd.f32 %v1115_v10, %v1114_v4  ;;  %v875_v19 = vmul.f32 %v1937_v9, %v1937_v9 }
 0x269   : > { %v876_v25 = vmul.f32 %v1941_v13, %v1941_v13 }
 0x26a   : > { %v877_v20 = vadd.f32 %v874_v15, %v873_v14  ;;  %v1117_v21 = vmul.f32 %v1116_v16, %v1924_v60 }
 0x26c   : > { %v878_v26 = vadd.f32 %v877_v20, %v875_v19  ;;  %v1957_v27 = vsub.f32 %v1911_v40, %v1117_v21  ;;  %v1960_v28 = vsub.f32 %v1909_v36, %v1117_v21  ;;  %v1963_v29 = vsub.f32 %v1913_v41, %v1117_v21  ;;  %v1513_v36 = vld [vmem:[%s1706_s15 + $0x1c0] sm:$0xff]  ;;  %v1512_v41 = vld [vmem:[%s1706_s15 + $0x1b8] sm:$0xff] }
 0x26d   : > { %v1968_v33 = vsub.f32 %v1918_v49, %v1117_v21  ;;  %1190 = vmatpush.msrb.mxu3 %v1513_v36 }
 0x26e   : > { %v879_v32 = vadd.f32 %v878_v26, %v876_v25  ;;  %v1122_v34 = vmul.f32 %v1957_v27, %v1957_v27  ;;  %v1123_v35 = vmul.f32 %v1960_v28, %v1960_v28  ;;  %v1124_v39 = vmul.f32 %v1963_v29, %v1963_v29 }
 0x26f   : > { %1191 = vmatpush.msrb.mxu3 %v1512_v41  ;;  %v1125_v44 = vmul.f32 %v1968_v33, %v1968_v33 }
 0x270   : > { %v880_v38 = vrot.slane %v879_v32, 4  ;;  %v1126_v40 = vadd.f32 %v1123_v35, %v1122_v34 }
 0x271   : > { %1192 = vmatpush.msrb.mxu3 %v1511_v46 }
 0x272   : > { %v881_v43 = vadd.f32 %v880_v38, %v879_v32  ;;  %v1127_v45 = vadd.f32 %v1126_v40, %v1124_v39  ;;  %v1151_v38 = vperm.slane %v1905_v23, 7 }
 0x273   : > { %1193 = vmatpush.msrb.mxu3 %v1510_v50 }
 0x274   : > { %v882_v48 = vrot.slane %v881_v43, 2  ;;  %v1128_v49 = vadd.f32 %v1127_v45, %v1125_v44 }
 0x275   : > { %1194 = vmatpush.msrb.mxu3 %v1509_v54 }
 0x276   : > { %v883_v52 = vadd.f32 %v882_v48, %v881_v43  ;;  %v1129_v53 = vrot.slane %v1128_v49, 4 }
 0x277   : > { %1195 = vmatpush.msrb.mxu3 %v1508_v58 }
 0x278   : > { %v884_v56 = vrot.slane %v883_v52, 1  ;;  %v1130_v57 = vadd.f32 %v1129_v53, %v1128_v49 }
 0x279   : > { %1196 = vmatpush.msrb.mxu3 %v1507_v62 }
 0x27a   : > { %v885_v61 = vadd.f32 %v884_v56, %v883_v52  ;;  %v1131_v63 = vrot.slane %v1130_v57, 2 }
 0x27b   : > { %1197 = vmatpush.msrb.mxu3 %v1506_v0 }
 0x27c   : > { %v886_v1 = vmul.f32 %v885_v61, %v1924_v60  ;;  %v1132_v2 = vadd.f32 %v1131_v63, %v1130_v57 }
 0x27d   : > { %1198 = vmatpush.msrb.mxu3 %v1505_v3 }
 0x27e   : > { %v887_v4 = vadd.f32 1e-05, %v886_v1  ;;  %v1133_v5 = vrot.slane %v1132_v2, 1 }
 0x280   : > { %1565 = vrsqrt.f32 %v887_v4  ;;  %v1134_v6 = vadd.f32 %v1133_v5, %v1132_v2  ;;  %vm894_vm14 = vweird.f32 %v887_v4 }
 0x282   : > { %v1135_v10 = vmul.f32 %v1134_v6, %v1924_v60 }
 0x284   : > { %v1136_v11 = vadd.f32 1e-05, %v1135_v10 }
 0x286   : > { %v1566_v12 = vpop.eup %1565  ;;  %1567 = vrsqrt.f32 %v1136_v11  ;;  %vm1143_vm2 = vweird.f32 %v1136_v11 }
 0x287   : > { %v889_v14 = vmul.f32 %v1566_v12, %v887_v4  ;;  %vm895_vm13 = vweird.f32 %v1566_v12  ;;  %v933_v4 = vperm.slane %v1905_v23, 3 }
 0x288   : > { %vm896_vm15 = vmor %vm894_vm14, %vm895_vm13 }
 0x289   : > { %v890_v15 = vmul.f32 %v1566_v12, %v889_v14 }
 0x28b   : > { %v891_v16 = vmul.f32 0.5, %v890_v15 }
 0x28c   : > { %v1568_v17 = vpop.eup %1567 }
 0x28d   : > { %v892_v18 = vsub.f32 1.5, %v891_v16  ;;  %v1138_v19 = vmul.f32 %v1568_v17, %v1136_v11  ;;  %vm1144_vm1 = vweird.f32 %v1568_v17 }
 0x28e   : > { %vm1145_vm3 = vmor %vm1143_vm2, %vm1144_vm1 }
 0x28f   : > { %v893_v20 = vmul.f32 %v1566_v12, %v892_v18  ;;  %v1139_v21 = vmul.f32 %v1568_v17, %v1138_v19 }
 0x291   : > { %v897_v24 = vsel %vm896_vm15, %v1566_v12, %v893_v20  ;;  %v1140_v25 = vmul.f32 0.5, %v1139_v21  ;;  %v1182_v12 = vperm.slane %v2000_v37, 1 }
 0x292   : > { %v898_v26 = vmul.f32 %v897_v24, %v1933_v7  ;;  %v899_v34 = vmul.f32 %v897_v24, %v1935_v8  ;;  %v900_v45 = vmul.f32 %v897_v24, %v1937_v9 }
 0x293   : > { %v1141_v31 = vsub.f32 1.5, %v1140_v25 }
 0x294   : > { %v903_v32 = vmul.f32 %v902_v22, %v898_v26  ;;  %v904_v41 = vmul.f32 %v902_v22, %v899_v34  ;;  %v905_v50 = vmul.f32 %v902_v22, %v900_v45 }
 0x295   : > { %v1142_v35 = vmul.f32 %v1568_v17, %v1141_v31 }
 0x296   : > { %v908_v36 = vadd.f32 %v907_v30, %v903_v32  ;;  %v909_v8 = vadd.f32 %v907_v30, %v904_v41  ;;  %v910_v53 = vadd.f32 %v907_v30, %v905_v50 }
 0x297   : > { %v1146_v39 = vsel %vm1145_vm3, %v1568_v17, %v1142_v35 }
 0x298   : > { %v912_v40 = vmax.f32 %v908_v36, 0.0  ;;  %v1147_v7 = vmul.f32 %v1146_v39, %v1957_v27  ;;  %v1148_v44 = vmul.f32 %v1146_v39, %v1960_v28  ;;  %v913_v49 = vmax.f32 %v909_v8, 0.0 }
 0x299   : > { %v1149_v52 = vmul.f32 %v1146_v39, %v1963_v29  ;;  %v901_v27 = vmul.f32 %v897_v24, %v1941_v13  ;;  %v914_v56 = vmax.f32 %v910_v53, 0.0  ;;  %v1150_v9 = vmul.f32 %v1146_v39, %v1968_v33 }
 0x29a   : > { %950 = vmatmul.f32.vlgmr.msra.gmra.mxu2 %v912_v40  ;;  %v1152_v43 = vmul.f32 %v1151_v38, %v1147_v7  ;;  %v1153_v48 = vmul.f32 %v1151_v38, %v1148_v44 }
 0x29b   : > { %v1154_v55 = vmul.f32 %v1151_v38, %v1149_v52  ;;  %v906_v28 = vmul.f32 %v902_v22, %v901_v27  ;;  %v1155_v61 = vmul.f32 %v1151_v38, %v1150_v9 }
 0x29c   : > { %v1157_v46 = vadd.f32 %v1156_v42, %v1152_v43  ;;  %v1158_v51 = vadd.f32 %v1156_v42, %v1153_v48 }
 0x29d   : > { %v1159_v57 = vadd.f32 %v1156_v42, %v1154_v55  ;;  %v911_v58 = vadd.f32 %v907_v30, %v906_v28  ;;  %v1160_v63 = vadd.f32 %v1156_v42, %v1155_v61 }
 0x29e   : > { %v1161_v47 = vmax.f32 %v1157_v46, 0.0  ;;  %v1162_v54 = vmax.f32 %v1158_v51, 0.0 }
 0x29f   : > { %v1163_v59 = vmax.f32 %v1159_v57, 0.0  ;;  %v915_v62 = vmax.f32 %v911_v58, 0.0  ;;  %v1164_v29 = vmax.f32 %v1160_v63, 0.0 }
 0x2a0   : > { %1199 = vmatmul.f32.vlgmr.msrb.gmra.mxu3 %v1161_v47 }
 0x2a2   : > { %953 = vmatmul.f32.gmra.mxu2 %v913_v49 }
 0x2a8   : > { %1202 = vmatmul.f32.gmra.mxu3 %v1162_v54 }
 0x2aa   : > { %956 = vmatmul.f32.gmra.mxu2 %v914_v56 }
 0x2b0   : > { %1205 = vmatmul.f32.gmra.mxu3 %v1163_v59 }
 0x2b2   : > { %959 = vmatmul.f32.gmra.mxu2 %v915_v62 }
 0x2b8   : > { %1208 = vmatmul.f32.gmra.mxu3 %v1164_v29 }
 0x31d   : > { %v951_v13 = vpop.f32.mrf.mxu2 }
 0x31e   : > { %v952_v6 = vadd.f32 %v951_v13, %v933_v4 }
 0x323   : > { %v1200_v0 = vpop.f32.mrf.mxu3 }
 0x324   : > { %v1201_v19 = vadd.f32 %v1200_v0, %v1182_v12 }
 0x325   : > { %v954_v1 = vpop.f32.mrf.mxu2 }
 0x326   : > { %v955_v5 = vadd.f32 %v954_v1, %v933_v4 }
 0x328   : > { %v963_v10 = vadd.f32 %v955_v5, %v952_v6 }
 0x32b   : > { %v1203_v2 = vpop.f32.mrf.mxu3 }
 0x32c   : > { %v1204_v17 = vadd.f32 %v1203_v2, %v1182_v12 }
 0x32d   : > { %v957_v3 = vpop.f32.mrf.mxu2 }
 0x32e   : > { %v958_v33 = vadd.f32 %v957_v3, %v933_v4  ;;  %v1212_v22 = vadd.f32 %v1204_v17, %v1201_v19 }
 0x330   : > { %v964_v15 = vadd.f32 %v963_v10, %v958_v33 }
 0x333   : > { %v1206_v11 = vpop.f32.mrf.mxu3 }
 0x334   : > { %v1207_v20 = vadd.f32 %v1206_v11, %v1182_v12 }
 0x335   : > { %v960_v14 = vpop.f32.mrf.mxu2 }
 0x336   : > { %v961_v16 = vadd.f32 %v960_v14, %v933_v4  ;;  %v1213_v26 = vadd.f32 %v1212_v22, %v1207_v20 }
 0x338   : > { %v965_v18 = vadd.f32 %v964_v15, %v961_v16 }
 0x33a   : > { %v966_v21 = vrot.slane %v965_v18, 4 }
 0x33b   : > { %v1209_v25 = vpop.f32.mrf.mxu3 }
 0x33c   : > { %v967_v24 = vadd.f32 %v966_v21, %v965_v18  ;;  %v1210_v30 = vadd.f32 %v1209_v25, %v1182_v12 }
 0x33e   : > { %v968_v31 = vrot.slane %v967_v24, 2  ;;  %v1214_v32 = vadd.f32 %v1213_v26, %v1210_v30 }
 0x340   : > { %v969_v34 = vadd.f32 %v968_v31, %v967_v24  ;;  %v1215_v35 = vrot.slane %v1214_v32, 4 }
 0x342   : > { %v970_v36 = vrot.slane %v969_v34, 1  ;;  %v1216_v38 = vadd.f32 %v1215_v35, %v1214_v32  ;;  %v1006_v32 = vperm.slane %v1905_v23, 4 }
 0x344   : > { %v971_v39 = vadd.f32 %v970_v36, %v969_v34  ;;  %v1217_v40 = vrot.slane %v1216_v38, 2 }
 0x346   : > { %v972_v41 = vmul.f32 %v971_v39, %v1924_v60  ;;  %v1218_v7 = vadd.f32 %v1217_v40, %v1216_v38  ;;  %v1011_v40 = vperm.slane %v1905_v23, 5 }
 0x348   : > { %v973_v42 = vsub.f32 %v952_v6, %v972_v41  ;;  %v974_v43 = vsub.f32 %v955_v5, %v972_v41  ;;  %v975_v44 = vsub.f32 %v958_v33, %v972_v41  ;;  %v1219_v8 = vrot.slane %v1218_v7, 1 }
 0x349   : > { %v976_v45 = vsub.f32 %v961_v16, %v972_v41  ;;  %v1255_v41 = vperm.slane %v2000_v37, 2 }
 0x34a   : > { %v977_v46 = vmul.f32 %v973_v42, %v973_v42  ;;  %v978_v47 = vmul.f32 %v974_v43, %v974_v43  ;;  %v1220_v48 = vadd.f32 %v1219_v8, %v1218_v7  ;;  %v979_v49 = vmul.f32 %v975_v44, %v975_v44 }
 0x34b   : > { %v980_v52 = vmul.f32 %v976_v45, %v976_v45  ;;  %v1260_v7 = vperm.slane %v2000_v37, 3 }
 0x34c   : > { %v981_v50 = vadd.f32 %v978_v47, %v977_v46  ;;  %v1221_v51 = vmul.f32 %v1220_v48, %v1924_v60 }
 0x34e   : > { %v982_v27 = vadd.f32 %v981_v50, %v979_v49  ;;  %v1222_v53 = vsub.f32 %v1201_v19, %v1221_v51  ;;  %v1223_v54 = vsub.f32 %v1204_v17, %v1221_v51  ;;  %v1224_v55 = vsub.f32 %v1207_v20, %v1221_v51 }
 0x34f   : > { %v1225_v28 = vsub.f32 %v1210_v30, %v1221_v51 }
 0x350   : > { %v983_v56 = vadd.f32 %v982_v27, %v980_v52  ;;  %v1226_v9 = vmul.f32 %v1222_v53, %v1222_v53  ;;  %v1227_v57 = vmul.f32 %v1223_v54, %v1223_v54  ;;  %v1228_v59 = vmul.f32 %v1224_v55, %v1224_v55 }
 0x351   : > { %v1229_v63 = vmul.f32 %v1225_v28, %v1225_v28 }
 0x352   : > { %v984_v58 = vrot.slane %v983_v56, 4  ;;  %v1230_v61 = vadd.f32 %v1227_v57, %v1226_v9 }
 0x354   : > { %v985_v62 = vadd.f32 %v984_v58, %v983_v56  ;;  %v1231_v29 = vadd.f32 %v1230_v61, %v1228_v59 }
 0x356   : > { %v986_v13 = vrot.slane %v985_v62, 2  ;;  %v1232_v0 = vadd.f32 %v1231_v29, %v1229_v63 }
 0x358   : > { %v987_v1 = vadd.f32 %v986_v13, %v985_v62  ;;  %v1233_v2 = vrot.slane %v1232_v0, 4 }
 0x35a   : > { %v988_v3 = vrot.slane %v987_v1, 1  ;;  %v1234_v4 = vadd.f32 %v1233_v2, %v1232_v0 }
 0x35c   : > { %v989_v5 = vadd.f32 %v988_v3, %v987_v1  ;;  %v1235_v6 = vrot.slane %v1234_v4, 2 }
 0x35e   : > { %v990_v33 = vmul.f32 %v989_v5, %v1924_v60  ;;  %v1236_v10 = vadd.f32 %v1235_v6, %v1234_v4 }
 0x360   : > { %v991_v11 = vadd.f32 1e-05, %v990_v33  ;;  %v1237_v12 = vrot.slane %v1236_v10, 1 }
 0x362   : > { %1569 = vrsqrt.f32 %v991_v11  ;;  %v1238_v14 = vadd.f32 %v1237_v12, %v1236_v10  ;;  %vm998_vm6 = vweird.f32 %v991_v11 }
 0x364   : > { %v1239_v15 = vmul.f32 %v1238_v14, %v1924_v60 }
 0x366   : > { %v1240_v16 = vadd.f32 1e-05, %v1239_v15 }
 0x368   : > { %v1570_v17 = vpop.eup %1569  ;;  %1571 = vrsqrt.f32 %v1240_v16  ;;  %vm1247_vm9 = vweird.f32 %v1240_v16 }
 0x369   : > { %v993_v18 = vmul.f32 %v1570_v17, %v991_v11  ;;  %vm999_vm4 = vweird.f32 %v1570_v17 }
 0x36a   : > { %vm1000_vm7 = vmor %vm998_vm6, %vm999_vm4 }
 0x36b   : > { %v994_v19 = vmul.f32 %v1570_v17, %v993_v18 }
 0x36d   : > { %v995_v20 = vmul.f32 0.5, %v994_v19 }
 0x36e   : > { %v1572_v21 = vpop.eup %1571 }
 0x36f   : > { %v996_v22 = vsub.f32 1.5, %v995_v20  ;;  %v1242_v24 = vmul.f32 %v1572_v21, %v1240_v16  ;;  %vm1248_vm8 = vweird.f32 %v1572_v21 }
 0x370   : > { %vm1249_vm10 = vmor %vm1247_vm9, %vm1248_vm8 }
 0x371   : > { %v997_v25 = vmul.f32 %v1570_v17, %v996_v22  ;;  %v1243_v26 = vmul.f32 %v1572_v21, %v1242_v24 }
 0x373   : > { %v1001_v30 = vsel %vm1000_vm7, %v1570_v17, %v997_v25  ;;  %v1244_v31 = vmul.f32 0.5, %v1243_v26 }
 0x374   : > { %v1002_v60 = vmul.f32 %v1001_v30, %v973_v42  ;;  %v1003_v34 = vmul.f32 %v1001_v30, %v974_v43  ;;  %v1004_v35 = vmul.f32 %v1001_v30, %v975_v44  ;;  %v1005_v38 = vmul.f32 %v1001_v30, %v976_v45 }
 0x375   : > { %v1245_v36 = vsub.f32 1.5, %v1244_v31 }
 0x376   : > { %v1007_v8 = vmul.f32 %v1006_v32, %v1002_v60  ;;  %v1008_v46 = vmul.f32 %v1006_v32, %v1003_v34  ;;  %v1009_v47 = vmul.f32 %v1006_v32, %v1004_v35  ;;  %v1010_v44 = vmul.f32 %v1006_v32, %v1005_v38 }
 0x377   : > { %v1246_v39 = vmul.f32 %v1572_v21, %v1245_v36 }
 0x378   : > { %v1012_v56 = vadd.f32 %v1011_v40, %v1007_v8  ;;  %v1013_v23 = vadd.f32 %v1011_v40, %v1008_v46  ;;  %v1014_v9 = vadd.f32 %v1011_v40, %v1009_v47  ;;  %v1015_v61 = vadd.f32 %v1011_v40, %v1010_v44 }
 0x379   : > { %v1250_v48 = vsel %vm1249_vm10, %v1572_v21, %v1246_v39 }
 0x37a   : > { %v1251_v49 = vmul.f32 %v1250_v48, %v1222_v53  ;;  %v1252_v50 = vmul.f32 %v1250_v48, %v1223_v54  ;;  %v1253_v42 = vmul.f32 %v1250_v48, %v1224_v55  ;;  %v1254_v43 = vmul.f32 %v1250_v48, %v1225_v28 }
 0x37c   : > { %v1256_v51 = vmul.f32 %v1255_v41, %v1251_v49  ;;  %v1257_v45 = vmul.f32 %v1255_v41, %v1252_v50  ;;  %v1258_v52 = vmul.f32 %v1255_v41, %v1253_v42  ;;  %v1259_v27 = vmul.f32 %v1255_v41, %v1254_v43 }
 0x37e   : > { %v1261_v57 = vadd.f32 %v1260_v7, %v1256_v51  ;;  %v1262_v58 = vadd.f32 %v1260_v7, %v1257_v45  ;;  %v1263_v59 = vadd.f32 %v1260_v7, %v1258_v52  ;;  %v1264_v37 = vadd.f32 %v1260_v7, %v1259_v27 }
 0x380   : > { %v1265_v62 = vadd.f32 %v1261_v57, %v1012_v56  ;;  %v1266_v63 = vadd.f32 %v1262_v58, %v1013_v23  ;;  %v1267_v29 = vadd.f32 %v1263_v59, %v1014_v9  ;;  %v1268_v53 = vadd.f32 %v1264_v37, %v1015_v61 }
 0x381   : > { %1276 = sbr.rel (%p1521_p5) target bundleno = 1171 (0x493), region = 80 }
 0x382   : > { %1269 = vst [vmem:[#allocation2 + $0x10] sm:$0xff] %v1265_v62 }
 0x383   : > { %1270 = vst [vmem:[#allocation2] sm:$0xff] %v1266_v63 }
 0x384   : > { %1271 = vst [vmem:[#allocation2 + $0x18] sm:$0xff] %v1267_v29 }
 0x385   : > { %1272 = vst [vmem:[#allocation2 + $0x8] sm:$0xff] %v1268_v53 }
 0x386   : > { %v1277_v28 = vlaneseq  ;;  %v1573_v13 = vld [vmem:[%s2088_s5] ss:$0 sm:$0xff]  ;;  %v1326_v2 = vld [vmem:[%s2094_s11 + $0x78] sm:$0xff]  ;;  %v1325_v3 = vld [vmem:[%s2094_s11 + $0x70] sm:$0xff]  ;;  %v1619_v6 = vmov 0.0  }
 0x387   : > { %1331 = vmatpush.msra.mxu1 %v1326_v2  ;;  %v1324_v5 = vld [vmem:[%s2094_s11 + $0x68] sm:$0xff]  ;;  %v1323_v10 = vld [vmem:[%s2094_s11 + $0x60] sm:$0xff]  ;;  %v1322_v11 = vld [vmem:[%s2094_s11 + $0x58] sm:$0xff] }
 0x388   : > { %v1278_v1 = vshrl.u32 %v1277_v28, 7  ;;  %v1321_v12 = vld [vmem:[%s2094_s11 + $0x50] sm:$0xff]  ;;  %v1320_v14 = vld [vmem:[%s2094_s11 + $0x48] sm:$0xff]  ;;  %v1319_v15 = vld [vmem:[%s2094_s11 + $0x40] sm:$0xff] }
 0x389   : > { %v1284_v4 = vld [vmem:[#allocation2 + $0x10] sm:$0xff]  ;;  %1332 = vmatpush.msra.mxu1 %v1325_v3  ;;  %v1318_v16 = vld [vmem:[%s2094_s11 + $0x38] sm:$0xff]  ;;  %v1316_v18 = vld [vmem:[%s2094_s11 + $0x28] sm:$0xff] }
 0x38a   : > { %v1285_v0 = vld [vmem:[#allocation2] sm:$0xff]  ;;  %vm1281_vm11 = vcmp.eq.s32.totalorder %v1278_v1, %v1573_v13  ;;  %v1317_v17 = vld [vmem:[%s2094_s11 + $0x30] sm:$0xff]  ;;  %v1314_v20 = vld [vmem:[%s2094_s11 + $0x18] sm:$0xff] }
 0x38b   : > { %v1286_v55 = vld [vmem:[#allocation2 + $0x18] sm:$0xff]  ;;  %v1522_v33 = vsel %vm1281_vm11, 1.0, %v1619_v6  ;;  %1333 = vmatpush.msra.mxu1 %v1324_v5  ;;  %v1315_v19 = vld [vmem:[%s2094_s11 + $0x20] sm:$0xff]  ;;  %v1313_v21 = vld [vmem:[%s2094_s11 + $0x10] sm:$0xff] }
 0x38c   : > { %v1287_v54 = vld [vmem:[#allocation2 + $0x8] sm:$0xff]  ;;  %v1311_v24 = vld [vmem:[%s2094_s11] sm:$0xff] }
 0x38d   : > { %1303 = vmatpush.msra.mxu0 %v1287_v54  ;;  %1334 = vmatpush.msra.mxu1 %v1323_v10  ;;  %v1312_v22 = vld [vmem:[%s2094_s11 + $0x8] sm:$0xff]  ;;  %v1574_v26 = vld [vmem:[%s2095_s12] ss:$0 sm:$0xff] }
 0x38f   : > { %1304 = vmatpush.msra.mxu0 %v1286_v55  ;;  %1335 = vmatpush.msra.mxu1 %v1322_v11 }
 0x391   : > { %1305 = vmatpush.msra.mxu0 %v1285_v0  ;;  %1336 = vmatpush.msra.mxu1 %v1321_v12 }
 0x393   : > { %1306 = vmatpush.msra.mxu0 %v1284_v4  ;;  %1337 = vmatpush.msra.mxu1 %v1320_v14 }
 0x394   : > { %1523 = vmatmul.msk.f32.vlgmr.msra.gmra.mxu0 %vm764_vm0, %v1522_v33 }
 0x395   : > { %1338 = vmatpush.msra.mxu1 %v1319_v15 }
 0x397   : > { %1339 = vmatpush.msra.mxu1 %v1318_v16 }
 0x399   : > { %1340 = vmatpush.msra.mxu1 %v1317_v17 }
 0x39b   : > { %1341 = vmatpush.msra.mxu1 %v1316_v18 }
 0x39d   : > { %1342 = vmatpush.msra.mxu1 %v1315_v19 }
 0x39f   : > { %1343 = vmatpush.msra.mxu1 %v1314_v20 }
 0x3a1   : > { %1344 = vmatpush.msra.mxu1 %v1313_v21 }
 0x3a3   : > { %1345 = vmatpush.msra.mxu1 %v1312_v22 }
 0x3a5   : > { %1346 = vmatpush.msra.mxu1 %v1311_v24 }
 0x411   : > { %v1308_v25 = vpop.f32.mrf.mxu0 }
 0x412   : > { %1347 = vmatmul.f32.vlgmr.msra.gmra.mxu1 %v1308_v25 }
 0x48f   : > { %v1348_v30 = vpop.f32.mrf.mxu1 }
 0x490   : > { %v1349_v31 = vadd.f32 %v1574_v26, %v1348_v30 }
 0x492   : > { %1351 = vst [vmem:[#allocation5] sm:$0xff] %v1349_v31 }
 0x493 PF: > { %p1542_p6 = scmp.eq.s32.totalorder %s1697_s26, 1  ;;  %s1620_s23 = smov [#allocation5]  }
 0x494   : > { %s1358_s24 = sshll.u32 %s1620_s23, 4  ;;  %s1360_s29 = sshll.u32 %s2096_s13, 4  ;;  %s1359_s24 = int_to_ptr.vmem [resolvable:$true] %s1358_s24  ;;  %s1361_s29 = int_to_ptr.hbm [resolvable:$true] %s1360_s29 }
 0x495   : > { %1539 = dma.vmem_to_hbm [thread:$0]  (%p1542_p6), %s1359_s24, 128, %s1361_s29, [#allocation6]  }
 0x496   : > { %1608 = dma.done.wait (%p1542_p6), [#allocation6], 128  }
 0x497   : > { %1610 = vsyncadd (%p1542_p6), [#allocation6], 4294967168 }
 0x498 PF: > { %s24_s25 = sadd.s32 1, %s1613_s25  }
 0x499   : > { %p21_p7 = scmp.ge.s32.totalorder %s24_s25, 4  }
 0x49b   :  { %23 = sbr.rel (!%p21_p7) target bundleno = 1 (0x1), region = 113 }
 0x4a0   :  { %1374 = vsyncpa [#allocation6], 1 }
 0x4a1   :  { %1376 = vsyncpa [#allocation6 + $0x1], 1 }

</bundles_post_ra>
